<compile_context>
chip_gen: v5e
topology: v5e:2x2
jax: 0.10.0
libtpu: 0.0.40
codegen_flags: <defaults>
</compile_context>

<pallas_src>
import functools

import jax
import jax.numpy as jnp
from jax.experimental import pallas as pl
from jax.experimental.pallas import tpu as pltpu


# --------------------------------- kernel ------------------------------------

def lstm_fc_kernel(x_ref,      # (T*Bp, I)  f32, time-major rows of Bp
                   wih0_ref,   # (I,  Gp)   f32  (prescale folded)
                   whh0_ref,   # (H,  Gp)   bf16 (prescale folded)
                   b0_ref,     # (1,  Gp)   f32  (bih0+bhh0, prescale folded)
                   wih1_ref,   # (H,  Gp)   bf16
                   whh1_ref,   # (H,  Gp)   bf16
                   b1_ref,     # (1,  Gp)   f32
                   fcw_ref,    # (H,  Op)   f32
                   fcb_ref,    # (1,  Op)   f32
                   out_ref):   # (Bp, Op)   f32
    TB, _ = x_ref.shape
    H, Gp = whh0_ref.shape
    Bp = out_ref.shape[0]
    T = TB // Bp
    bf16 = jnp.bfloat16

    # Hoisted layer-0 input projection (+ bias), one MXU matmul off the serial
    # chain; kept f32 for accuracy since it does not sit on the recurrence.
    xproj = (jnp.dot(x_ref[...], wih0_ref[...],
                     preferred_element_type=jnp.float32)
             + b0_ref[...])                                   # (T*Bp, Gp)

    whh0 = whh0_ref[...]
    wih1 = wih1_ref[...]
    whh1 = whh1_ref[...]
    b1 = jnp.broadcast_to(b1_ref[...], (Bp, Gp))              # hoisted broadcast

    def gates(g, c):
        # i/f/o weight rows were pre-scaled by 0.5 in the wrapper, so
        # sigmoid(z) = 0.5*tanh(z/2)+0.5 becomes 0.5*t+0.5 on the tanh'd slab.
        t = jnp.tanh(g)                                       # one EUP stream
        i_g = 0.5 * t[:, 0 * H:1 * H] + 0.5
        f_g = 0.5 * t[:, 1 * H:2 * H] + 0.5
        g_g = t[:, 2 * H:3 * H]
        o_g = 0.5 * t[:, 3 * H:4 * H] + 0.5
        c_new = f_g * c + i_g * g_g
        h_new = o_g * jnp.tanh(c_new)
        return h_new, c_new

    zeros = jnp.zeros((Bp, H), jnp.float32)
    h0, c0, h1, c1 = zeros, zeros, zeros, zeros

    # Fully unrolled time loop (T=8 is compile-time): cross-step scheduler
    # visibility; per step only the h-recurrence matmuls are on the chain.
    for t in range(T):
        g0 = (xproj[t * Bp:(t + 1) * Bp, :]
              + jnp.dot(h0.astype(bf16), whh0,
                        preferred_element_type=jnp.float32))
        h0, c0 = gates(g0, c0)
        # layer 1: two dots into the same f32 accumulator (no lane concat).
        g1 = (jnp.dot(h0.astype(bf16), wih1,
                      preferred_element_type=jnp.float32)
              + jnp.dot(h1.astype(bf16), whh1,
                        preferred_element_type=jnp.float32)
              + b1)
        h1, c1 = gates(g1, c1)

    # out[:, -1, :] == h1 after the last step; dropout(p=0) is identity.
    # (Bp, Op) lane-dense unmasked store; real rows/cols sliced in the wrapper.
    out_ref[...] = (jnp.dot(h1, fcw_ref[...],
                            preferred_element_type=jnp.float32)
                    + fcb_ref[...])


# ---------------------------- params preparation -----------------------------

def _round_up(n, m):
    return ((n + m - 1) // m) * m


def _gate_row_scale(H):
    # PyTorch gate order along the 4H axis: [i, f, g, o].  Sigmoid gates get a
    # 0.5 prescale folded into their rows (sigmoid(z) = 0.5*tanh(z/2) + 0.5).
    return jnp.concatenate([jnp.full((H,), 0.5, jnp.float32),
                            jnp.full((H,), 0.5, jnp.float32),
                            jnp.ones((H,), jnp.float32),
                            jnp.full((H,), 0.5, jnp.float32)])


def _prep_gate_weight(w, H, Gp):
    # (4H, D) -> (D, Gp): prescale i/f/o rows, pad total gate dim, transpose.
    w = w.astype(jnp.float32) * _gate_row_scale(H)[:, None]
    w = jnp.pad(w, ((0, Gp - 4 * H), (0, 0)))
    return w.T


def _prep_gate_bias(bih, bhh, H, Gp):
    b = (bih + bhh).astype(jnp.float32) * _gate_row_scale(H)
    return jnp.pad(b, (0, Gp - 4 * H)).reshape(1, Gp)


def prepare_params(params):
    """One-time weight prep: prescale, pad, transpose, bf16-cast the recurrent
    weights.  Call once; pass the result to every lstm_model_forward call."""
    (wih0, whh0, bih0, bhh0,
     wih1, whh1, bih1, bhh1,
     fcw, fcb) = params
    H = whh0.shape[1]          # whh0 is (4H, H)
    O = fcw.shape[0]           # fcw  is (O, H)
    Gp = _round_up(4 * H, 128)     # pad TOTAL gate width, not per gate
    Op = _round_up(O, 128)         # lane-dense output store

    bf16 = jnp.bfloat16
    wih0_p = _prep_gate_weight(wih0, H, Gp)                 # (I, Gp) f32
    whh0_p = _prep_gate_weight(whh0, H, Gp).astype(bf16)    # (H, Gp) bf16
    b0_p = _prep_gate_bias(bih0, bhh0, H, Gp)               # (1, Gp) f32
    wih1_p = _prep_gate_weight(wih1, H, Gp).astype(bf16)    # (H, Gp) bf16
    whh1_p = _prep_gate_weight(whh1, H, Gp).astype(bf16)    # (H, Gp) bf16
    b1_p = _prep_gate_bias(bih1, bhh1, H, Gp)               # (1, Gp) f32
    fcw_p = jnp.pad(fcw.astype(jnp.float32), ((0, Op - O), (0, 0))).T  # (H, Op)
    fcb_p = jnp.pad(fcb.astype(jnp.float32), (0, Op - O)).reshape(1, Op)
    return (wih0_p, whh0_p, b0_p, wih1_p, whh1_p, b1_p, fcw_p, fcb_p)


# --------------------------------- forward -----------------------------------

@functools.partial(jax.jit, static_argnames=("output_size",))
def lstm_model_forward(x, prepped, *, output_size):
    """x: (B, T, I) batch-first (PyTorch convention). Returns (B, output_size)."""
    B, T, I = x.shape
    (wih0_p, whh0_p, b0_p, wih1_p, whh1_p, b1_p, fcw_p, fcb_p) = prepped
    Op = fcw_p.shape[1]
    Bp = max(_round_up(B, 8), 8)       # sublane-full batch tile

    # time-major, batch-padded activations as a 2-D (T*Bp, I) slab.
    x_tm = jnp.transpose(x, (1, 0, 2)).astype(jnp.float32)      # (T, B, I)
    x_tm = jnp.pad(x_tm, ((0, 0), (0, Bp - B), (0, 0)))         # (T, Bp, I)
    x2d = x_tm.reshape(T * Bp, I)

    vmem = pl.BlockSpec(memory_space=pltpu.MemorySpace.VMEM)
    out_p = pl.pallas_call(
        lstm_fc_kernel,
        out_shape=jax.ShapeDtypeStruct((Bp, Op), jnp.float32),
        in_specs=[vmem] * 9,
        out_specs=vmem,
    )(x2d, wih0_p, whh0_p, b0_p, wih1_p, whh1_p, b1_p, fcw_p, fcb_p)

    return out_p[:B, :output_size]


# ------------------------------ init & reference -----------------------------

def init_params(key, input_size, hidden_size, output_size):
    """Deterministic PyTorch-like init: U(-1/sqrt(H), 1/sqrt(H))."""
    H = hidden_size
    bound = 1.0 / jnp.sqrt(jnp.float32(H))
    shapes = [
        (4 * H, input_size), (4 * H, H), (4 * H,), (4 * H,),   # layer 0
        (4 * H, H),          (4 * H, H), (4 * H,), (4 * H,),   # layer 1
        (output_size, H), (output_size,),                       # fc
    ]
    keys = jax.random.split(key, len(shapes))
    return [jax.random.uniform(k, s, jnp.float32, -bound, bound)
            for k, s in zip(keys, shapes)]


def reference_forward(x, params):
    """Pure-JAX f32 reference (no Pallas, no padding) for correctness check."""
    (wih0, whh0, bih0, bhh0, wih1, whh1, bih1, bhh1, fcw, fcb) = params
    B, T, I = x.shape
    H = whh0.shape[1]

    def cell(x_t, h, c, wih, whh, bih, bhh):
        g = x_t @ wih.T + h @ whh.T + bih + bhh
        i_g = jax.nn.sigmoid(g[:, 0 * H:1 * H])
        f_g = jax.nn.sigmoid(g[:, 1 * H:2 * H])
        g_g = jnp.tanh(g[:, 2 * H:3 * H])
        o_g = jax.nn.sigmoid(g[:, 3 * H:4 * H])
        c = f_g * c + i_g * g_g
        h = o_g * jnp.tanh(c)
        return h, c

    h0 = c0 = h1 = c1 = jnp.zeros((B, H), jnp.float32)
    for t in range(T):
        h0, c0 = cell(x[:, t, :], h0, c0, wih0, whh0, bih0, bhh0)
        h1, c1 = cell(h0, h1, c1, wih1, whh1, bih1, bhh1)
    return h1 @ fcw.T + fcb


if __name__ == "__main__":
    # Small shapes consistent with the module: (batch, seq, input_size)
    batch, seq_len = 2, 8
    input_size, hidden_size, num_layers, output_size = 16, 32, 2, 4

    key = jax.random.PRNGKey(0)
    kx, kp = jax.random.split(key)
    x = jax.random.normal(kx, (batch, seq_len, input_size), jnp.float32)
    params = init_params(kp, input_size, hidden_size, output_size)

    prepped = prepare_params(params)   # one-time weight prep (cached)
    out = lstm_model_forward(x, prepped, output_size=output_size)
    out = jax.block_until_ready(out)

    ref = reference_forward(x, params)
    assert out.shape == (batch, output_size)
    # bf16 recurrent-matmul operands (f32 accumulation) -> slightly looser
    # tolerance than a pure-f32 kernel, as anticipated by the perf review.
    assert jnp.allclose(out, ref, atol=5e-3, rtol=5e-3), (out, ref)
    print("KERNEL_OK")
</pallas_src>

<mosaic_0001>
module attributes {stable_mosaic.version = 11 : i64} {
  func.func @lstm_fc_kernel(%arg0: memref<64x16xf32, #tpu.memory_space<vmem>>, %arg1: memref<16x128xf32, #tpu.memory_space<vmem>>, %arg2: memref<32x128xbf16, #tpu.memory_space<vmem>>, %arg3: memref<1x128xf32, #tpu.memory_space<vmem>>, %arg4: memref<32x128xbf16, #tpu.memory_space<vmem>>, %arg5: memref<32x128xbf16, #tpu.memory_space<vmem>>, %arg6: memref<1x128xf32, #tpu.memory_space<vmem>>, %arg7: memref<32x128xf32, #tpu.memory_space<vmem>>, %arg8: memref<1x128xf32, #tpu.memory_space<vmem>>, %arg9: memref<8x128xf32, #tpu.memory_space<vmem>>) attributes {dimension_semantics = [], scalar_prefetch = 0 : i64, scratch_operands = 0 : i64, tpu.core_type = #tpu.core_type<tc>} {
    %c0 = arith.constant 0 : index
    %c0_0 = arith.constant 0 : index
    %0 = vector.load %arg0[%c0, %c0_0] : memref<64x16xf32, #tpu.memory_space<vmem>>, vector<64x16xf32>
    %c0_1 = arith.constant 0 : index
    %c0_2 = arith.constant 0 : index
    %1 = vector.load %arg1[%c0_1, %c0_2] : memref<16x128xf32, #tpu.memory_space<vmem>>, vector<16x128xf32>
    %cst = arith.constant dense<0.000000e+00> : vector<64x128xf32>
    %2 = tpu.matmul %0, %1, %cst {dimension_numbers = #tpu.dot_dimension_numbers<[1], [0], [0], [1], [0, 0, 1, 1], [], []>} : vector<64x16xf32>, vector<16x128xf32>, vector<64x128xf32> -> vector<64x128xf32>
    %c0_3 = arith.constant 0 : index
    %c0_4 = arith.constant 0 : index
    %3 = vector.load %arg3[%c0_3, %c0_4] : memref<1x128xf32, #tpu.memory_space<vmem>>, vector<1x128xf32>
    %4 = vector.broadcast %3 : vector<1x128xf32> to vector<64x128xf32>
    %5 = arith.addf %2, %4 : vector<64x128xf32>
    %c0_5 = arith.constant 0 : index
    %c0_6 = arith.constant 0 : index
    %6 = vector.load %arg2[%c0_5, %c0_6] : memref<32x128xbf16, #tpu.memory_space<vmem>>, vector<32x128xbf16>
    %c0_7 = arith.constant 0 : index
    %c0_8 = arith.constant 0 : index
    %7 = vector.load %arg4[%c0_7, %c0_8] : memref<32x128xbf16, #tpu.memory_space<vmem>>, vector<32x128xbf16>
    %c0_9 = arith.constant 0 : index
    %c0_10 = arith.constant 0 : index
    %8 = vector.load %arg5[%c0_9, %c0_10] : memref<32x128xbf16, #tpu.memory_space<vmem>>, vector<32x128xbf16>
    %c0_11 = arith.constant 0 : index
    %c0_12 = arith.constant 0 : index
    %9 = vector.load %arg6[%c0_11, %c0_12] : memref<1x128xf32, #tpu.memory_space<vmem>>, vector<1x128xf32>
    %10 = vector.shape_cast %9 : vector<1x128xf32> to vector<1x128xf32>
    %11 = vector.broadcast %10 : vector<1x128xf32> to vector<8x128xf32>
    %cst_13 = arith.constant 0.000000e+00 : f32
    %12 = vector.broadcast %cst_13 : f32 to vector<8x32xf32>
    %13 = vector.extract_strided_slice %5 {offsets = [0, 0], sizes = [8, 128], strides = [1, 1]} : vector<64x128xf32> to vector<8x128xf32>
    %14 = arith.truncf %12 : vector<8x32xf32> to vector<8x32xbf16>
    %cst_14 = arith.constant dense<0.000000e+00> : vector<8x128xf32>
    %15 = tpu.matmul %14, %6, %cst_14 {dimension_numbers = #tpu.dot_dimension_numbers<[1], [0], [0], [1], [0, 0, 1, 1], [], []>} : vector<8x32xbf16>, vector<32x128xbf16>, vector<8x128xf32> -> vector<8x128xf32>
    %16 = arith.addf %13, %15 : vector<8x128xf32>
    %17 = math.tanh %16 : vector<8x128xf32>
    %18 = vector.extract_strided_slice %17 {offsets = [0, 0], sizes = [8, 32], strides = [1, 1]} : vector<8x128xf32> to vector<8x32xf32>
    %cst_15 = arith.constant 5.000000e-01 : f32
    %19 = vector.broadcast %cst_15 : f32 to vector<8x32xf32>
    %20 = arith.mulf %19, %18 : vector<8x32xf32>
    %cst_16 = arith.constant 5.000000e-01 : f32
    %21 = vector.broadcast %cst_16 : f32 to vector<8x32xf32>
    %22 = arith.addf %20, %21 : vector<8x32xf32>
    %23 = vector.extract_strided_slice %17 {offsets = [0, 32], sizes = [8, 32], strides = [1, 1]} : vector<8x128xf32> to vector<8x32xf32>
    %cst_17 = arith.constant 5.000000e-01 : f32
    %24 = vector.broadcast %cst_17 : f32 to vector<8x32xf32>
    %25 = arith.mulf %24, %23 : vector<8x32xf32>
    %cst_18 = arith.constant 5.000000e-01 : f32
    %26 = vector.broadcast %cst_18 : f32 to vector<8x32xf32>
    %27 = arith.addf %25, %26 : vector<8x32xf32>
    %28 = vector.extract_strided_slice %17 {offsets = [0, 64], sizes = [8, 32], strides = [1, 1]} : vector<8x128xf32> to vector<8x32xf32>
    %29 = vector.extract_strided_slice %17 {offsets = [0, 96], sizes = [8, 32], strides = [1, 1]} : vector<8x128xf32> to vector<8x32xf32>
    %cst_19 = arith.constant 5.000000e-01 : f32
    %30 = vector.broadcast %cst_19 : f32 to vector<8x32xf32>
    %31 = arith.mulf %30, %29 : vector<8x32xf32>
    %cst_20 = arith.constant 5.000000e-01 : f32
    %32 = vector.broadcast %cst_20 : f32 to vector<8x32xf32>
    %33 = arith.addf %31, %32 : vector<8x32xf32>
    %34 = arith.mulf %27, %12 : vector<8x32xf32>
    %35 = arith.mulf %22, %28 : vector<8x32xf32>
    %36 = arith.addf %34, %35 : vector<8x32xf32>
    %37 = math.tanh %36 : vector<8x32xf32>
    %38 = arith.mulf %33, %37 : vector<8x32xf32>
    %39 = arith.truncf %38 : vector<8x32xf32> to vector<8x32xbf16>
    %cst_21 = arith.constant dense<0.000000e+00> : vector<8x128xf32>
    %40 = tpu.matmul %39, %7, %cst_21 {dimension_numbers = #tpu.dot_dimension_numbers<[1], [0], [0], [1], [0, 0, 1, 1], [], []>} : vector<8x32xbf16>, vector<32x128xbf16>, vector<8x128xf32> -> vector<8x128xf32>
    %41 = arith.truncf %12 : vector<8x32xf32> to vector<8x32xbf16>
    %cst_22 = arith.constant dense<0.000000e+00> : vector<8x128xf32>
    %42 = tpu.matmul %41, %8, %cst_22 {dimension_numbers = #tpu.dot_dimension_numbers<[1], [0], [0], [1], [0, 0, 1, 1], [], []>} : vector<8x32xbf16>, vector<32x128xbf16>, vector<8x128xf32> -> vector<8x128xf32>
    %43 = arith.addf %40, %42 : vector<8x128xf32>
    %44 = arith.addf %43, %11 : vector<8x128xf32>
    %45 = math.tanh %44 : vector<8x128xf32>
    %46 = vector.extract_strided_slice %45 {offsets = [0, 0], sizes = [8, 32], strides = [1, 1]} : vector<8x128xf32> to vector<8x32xf32>
    %cst_23 = arith.constant 5.000000e-01 : f32
    %47 = vector.broadcast %cst_23 : f32 to vector<8x32xf32>
    %48 = arith.mulf %47, %46 : vector<8x32xf32>
    %cst_24 = arith.constant 5.000000e-01 : f32
    %49 = vector.broadcast %cst_24 : f32 to vector<8x32xf32>
    %50 = arith.addf %48, %49 : vector<8x32xf32>
    %51 = vector.extract_strided_slice %45 {offsets = [0, 32], sizes = [8, 32], strides = [1, 1]} : vector<8x128xf32> to vector<8x32xf32>
    %cst_25 = arith.constant 5.000000e-01 : f32
    %52 = vector.broadcast %cst_25 : f32 to vector<8x32xf32>
    %53 = arith.mulf %52, %51 : vector<8x32xf32>
    %cst_26 = arith.constant 5.000000e-01 : f32
    %54 = vector.broadcast %cst_26 : f32 to vector<8x32xf32>
    %55 = arith.addf %53, %54 : vector<8x32xf32>
    %56 = vector.extract_strided_slice %45 {offsets = [0, 64], sizes = [8, 32], strides = [1, 1]} : vector<8x128xf32> to vector<8x32xf32>
    %57 = vector.extract_strided_slice %45 {offsets = [0, 96], sizes = [8, 32], strides = [1, 1]} : vector<8x128xf32> to vector<8x32xf32>
    %cst_27 = arith.constant 5.000000e-01 : f32
    %58 = vector.broadcast %cst_27 : f32 to vector<8x32xf32>
    %59 = arith.mulf %58, %57 : vector<8x32xf32>
    %cst_28 = arith.constant 5.000000e-01 : f32
    %60 = vector.broadcast %cst_28 : f32 to vector<8x32xf32>
    %61 = arith.addf %59, %60 : vector<8x32xf32>
    %62 = arith.mulf %55, %12 : vector<8x32xf32>
    %63 = arith.mulf %50, %56 : vector<8x32xf32>
    %64 = arith.addf %62, %63 : vector<8x32xf32>
    %65 = math.tanh %64 : vector<8x32xf32>
    %66 = arith.mulf %61, %65 : vector<8x32xf32>
    %67 = vector.extract_strided_slice %5 {offsets = [8, 0], sizes = [8, 128], strides = [1, 1]} : vector<64x128xf32> to vector<8x128xf32>
    %68 = arith.truncf %38 : vector<8x32xf32> to vector<8x32xbf16>
    %cst_29 = arith.constant dense<0.000000e+00> : vector<8x128xf32>
    %69 = tpu.matmul %68, %6, %cst_29 {dimension_numbers = #tpu.dot_dimension_numbers<[1], [0], [0], [1], [0, 0, 1, 1], [], []>} : vector<8x32xbf16>, vector<32x128xbf16>, vector<8x128xf32> -> vector<8x128xf32>
    %70 = arith.addf %67, %69 : vector<8x128xf32>
    %71 = math.tanh %70 : vector<8x128xf32>
    %72 = vector.extract_strided_slice %71 {offsets = [0, 0], sizes = [8, 32], strides = [1, 1]} : vector<8x128xf32> to vector<8x32xf32>
    %cst_30 = arith.constant 5.000000e-01 : f32
    %73 = vector.broadcast %cst_30 : f32 to vector<8x32xf32>
    %74 = arith.mulf %73, %72 : vector<8x32xf32>
    %cst_31 = arith.constant 5.000000e-01 : f32
    %75 = vector.broadcast %cst_31 : f32 to vector<8x32xf32>
    %76 = arith.addf %74, %75 : vector<8x32xf32>
    %77 = vector.extract_strided_slice %71 {offsets = [0, 32], sizes = [8, 32], strides = [1, 1]} : vector<8x128xf32> to vector<8x32xf32>
    %cst_32 = arith.constant 5.000000e-01 : f32
    %78 = vector.broadcast %cst_32 : f32 to vector<8x32xf32>
    %79 = arith.mulf %78, %77 : vector<8x32xf32>
    %cst_33 = arith.constant 5.000000e-01 : f32
    %80 = vector.broadcast %cst_33 : f32 to vector<8x32xf32>
    %81 = arith.addf %79, %80 : vector<8x32xf32>
    %82 = vector.extract_strided_slice %71 {offsets = [0, 64], sizes = [8, 32], strides = [1, 1]} : vector<8x128xf32> to vector<8x32xf32>
    %83 = vector.extract_strided_slice %71 {offsets = [0, 96], sizes = [8, 32], strides = [1, 1]} : vector<8x128xf32> to vector<8x32xf32>
    %cst_34 = arith.constant 5.000000e-01 : f32
    %84 = vector.broadcast %cst_34 : f32 to vector<8x32xf32>
    %85 = arith.mulf %84, %83 : vector<8x32xf32>
    %cst_35 = arith.constant 5.000000e-01 : f32
    %86 = vector.broadcast %cst_35 : f32 to vector<8x32xf32>
    %87 = arith.addf %85, %86 : vector<8x32xf32>
    %88 = arith.mulf %81, %36 : vector<8x32xf32>
    %89 = arith.mulf %76, %82 : vector<8x32xf32>
    %90 = arith.addf %88, %89 : vector<8x32xf32>
    %91 = math.tanh %90 : vector<8x32xf32>
    %92 = arith.mulf %87, %91 : vector<8x32xf32>
    %93 = arith.truncf %92 : vector<8x32xf32> to vector<8x32xbf16>
    %cst_36 = arith.constant dense<0.000000e+00> : vector<8x128xf32>
    %94 = tpu.matmul %93, %7, %cst_36 {dimension_numbers = #tpu.dot_dimension_numbers<[1], [0], [0], [1], [0, 0, 1, 1], [], []>} : vector<8x32xbf16>, vector<32x128xbf16>, vector<8x128xf32> -> vector<8x128xf32>
    %95 = arith.truncf %66 : vector<8x32xf32> to vector<8x32xbf16>
    %cst_37 = arith.constant dense<0.000000e+00> : vector<8x128xf32>
    %96 = tpu.matmul %95, %8, %cst_37 {dimension_numbers = #tpu.dot_dimension_numbers<[1], [0], [0], [1], [0, 0, 1, 1], [], []>} : vector<8x32xbf16>, vector<32x128xbf16>, vector<8x128xf32> -> vector<8x128xf32>
    %97 = arith.addf %94, %96 : vector<8x128xf32>
    %98 = arith.addf %97, %11 : vector<8x128xf32>
    %99 = math.tanh %98 : vector<8x128xf32>
    %100 = vector.extract_strided_slice %99 {offsets = [0, 0], sizes = [8, 32], strides = [1, 1]} : vector<8x128xf32> to vector<8x32xf32>
    %cst_38 = arith.constant 5.000000e-01 : f32
    %101 = vector.broadcast %cst_38 : f32 to vector<8x32xf32>
    %102 = arith.mulf %101, %100 : vector<8x32xf32>
    %cst_39 = arith.constant 5.000000e-01 : f32
    %103 = vector.broadcast %cst_39 : f32 to vector<8x32xf32>
    %104 = arith.addf %102, %103 : vector<8x32xf32>
    %105 = vector.extract_strided_slice %99 {offsets = [0, 32], sizes = [8, 32], strides = [1, 1]} : vector<8x128xf32> to vector<8x32xf32>
    %cst_40 = arith.constant 5.000000e-01 : f32
    %106 = vector.broadcast %cst_40 : f32 to vector<8x32xf32>
    %107 = arith.mulf %106, %105 : vector<8x32xf32>
    %cst_41 = arith.constant 5.000000e-01 : f32
    %108 = vector.broadcast %cst_41 : f32 to vector<8x32xf32>
    %109 = arith.addf %107, %108 : vector<8x32xf32>
    %110 = vector.extract_strided_slice %99 {offsets = [0, 64], sizes = [8, 32], strides = [1, 1]} : vector<8x128xf32> to vector<8x32xf32>
    %111 = vector.extract_strided_slice %99 {offsets = [0, 96], sizes = [8, 32], strides = [1, 1]} : vector<8x128xf32> to vector<8x32xf32>
    %cst_42 = arith.constant 5.000000e-01 : f32
    %112 = vector.broadcast %cst_42 : f32 to vector<8x32xf32>
    %113 = arith.mulf %112, %111 : vector<8x32xf32>
    %cst_43 = arith.constant 5.000000e-01 : f32
    %114 = vector.broadcast %cst_43 : f32 to vector<8x32xf32>
    %115 = arith.addf %113, %114 : vector<8x32xf32>
    %116 = arith.mulf %109, %64 : vector<8x32xf32>
    %117 = arith.mulf %104, %110 : vector<8x32xf32>
    %118 = arith.addf %116, %117 : vector<8x32xf32>
    %119 = math.tanh %118 : vector<8x32xf32>
    %120 = arith.mulf %115, %119 : vector<8x32xf32>
    %121 = vector.extract_strided_slice %5 {offsets = [16, 0], sizes = [8, 128], strides = [1, 1]} : vector<64x128xf32> to vector<8x128xf32>
    %122 = arith.truncf %92 : vector<8x32xf32> to vector<8x32xbf16>
    %cst_44 = arith.constant dense<0.000000e+00> : vector<8x128xf32>
    %123 = tpu.matmul %122, %6, %cst_44 {dimension_numbers = #tpu.dot_dimension_numbers<[1], [0], [0], [1], [0, 0, 1, 1], [], []>} : vector<8x32xbf16>, vector<32x128xbf16>, vector<8x128xf32> -> vector<8x128xf32>
    %124 = arith.addf %121, %123 : vector<8x128xf32>
    %125 = math.tanh %124 : vector<8x128xf32>
    %126 = vector.extract_strided_slice %125 {offsets = [0, 0], sizes = [8, 32], strides = [1, 1]} : vector<8x128xf32> to vector<8x32xf32>
    %cst_45 = arith.constant 5.000000e-01 : f32
    %127 = vector.broadcast %cst_45 : f32 to vector<8x32xf32>
    %128 = arith.mulf %127, %126 : vector<8x32xf32>
    %cst_46 = arith.constant 5.000000e-01 : f32
    %129 = vector.broadcast %cst_46 : f32 to vector<8x32xf32>
    %130 = arith.addf %128, %129 : vector<8x32xf32>
    %131 = vector.extract_strided_slice %125 {offsets = [0, 32], sizes = [8, 32], strides = [1, 1]} : vector<8x128xf32> to vector<8x32xf32>
    %cst_47 = arith.constant 5.000000e-01 : f32
    %132 = vector.broadcast %cst_47 : f32 to vector<8x32xf32>
    %133 = arith.mulf %132, %131 : vector<8x32xf32>
    %cst_48 = arith.constant 5.000000e-01 : f32
    %134 = vector.broadcast %cst_48 : f32 to vector<8x32xf32>
    %135 = arith.addf %133, %134 : vector<8x32xf32>
    %136 = vector.extract_strided_slice %125 {offsets = [0, 64], sizes = [8, 32], strides = [1, 1]} : vector<8x128xf32> to vector<8x32xf32>
    %137 = vector.extract_strided_slice %125 {offsets = [0, 96], sizes = [8, 32], strides = [1, 1]} : vector<8x128xf32> to vector<8x32xf32>
    %cst_49 = arith.constant 5.000000e-01 : f32
    %138 = vector.broadcast %cst_49 : f32 to vector<8x32xf32>
    %139 = arith.mulf %138, %137 : vector<8x32xf32>
    %cst_50 = arith.constant 5.000000e-01 : f32
    %140 = vector.broadcast %cst_50 : f32 to vector<8x32xf32>
    %141 = arith.addf %139, %140 : vector<8x32xf32>
    %142 = arith.mulf %135, %90 : vector<8x32xf32>
    %143 = arith.mulf %130, %136 : vector<8x32xf32>
    %144 = arith.addf %142, %143 : vector<8x32xf32>
    %145 = math.tanh %144 : vector<8x32xf32>
    %146 = arith.mulf %141, %145 : vector<8x32xf32>
    %147 = arith.truncf %146 : vector<8x32xf32> to vector<8x32xbf16>
    %cst_51 = arith.constant dense<0.000000e+00> : vector<8x128xf32>
    %148 = tpu.matmul %147, %7, %cst_51 {dimension_numbers = #tpu.dot_dimension_numbers<[1], [0], [0], [1], [0, 0, 1, 1], [], []>} : vector<8x32xbf16>, vector<32x128xbf16>, vector<8x128xf32> -> vector<8x128xf32>
    %149 = arith.truncf %120 : vector<8x32xf32> to vector<8x32xbf16>
    %cst_52 = arith.constant dense<0.000000e+00> : vector<8x128xf32>
    %150 = tpu.matmul %149, %8, %cst_52 {dimension_numbers = #tpu.dot_dimension_numbers<[1], [0], [0], [1], [0, 0, 1, 1], [], []>} : vector<8x32xbf16>, vector<32x128xbf16>, vector<8x128xf32> -> vector<8x128xf32>
    %151 = arith.addf %148, %150 : vector<8x128xf32>
    %152 = arith.addf %151, %11 : vector<8x128xf32>
    %153 = math.tanh %152 : vector<8x128xf32>
    %154 = vector.extract_strided_slice %153 {offsets = [0, 0], sizes = [8, 32], strides = [1, 1]} : vector<8x128xf32> to vector<8x32xf32>
    %cst_53 = arith.constant 5.000000e-01 : f32
    %155 = vector.broadcast %cst_53 : f32 to vector<8x32xf32>
    %156 = arith.mulf %155, %154 : vector<8x32xf32>
    %cst_54 = arith.constant 5.000000e-01 : f32
    %157 = vector.broadcast %cst_54 : f32 to vector<8x32xf32>
    %158 = arith.addf %156, %157 : vector<8x32xf32>
    %159 = vector.extract_strided_slice %153 {offsets = [0, 32], sizes = [8, 32], strides = [1, 1]} : vector<8x128xf32> to vector<8x32xf32>
    %cst_55 = arith.constant 5.000000e-01 : f32
    %160 = vector.broadcast %cst_55 : f32 to vector<8x32xf32>
    %161 = arith.mulf %160, %159 : vector<8x32xf32>
    %cst_56 = arith.constant 5.000000e-01 : f32
    %162 = vector.broadcast %cst_56 : f32 to vector<8x32xf32>
    %163 = arith.addf %161, %162 : vector<8x32xf32>
    %164 = vector.extract_strided_slice %153 {offsets = [0, 64], sizes = [8, 32], strides = [1, 1]} : vector<8x128xf32> to vector<8x32xf32>
    %165 = vector.extract_strided_slice %153 {offsets = [0, 96], sizes = [8, 32], strides = [1, 1]} : vector<8x128xf32> to vector<8x32xf32>
    %cst_57 = arith.constant 5.000000e-01 : f32
    %166 = vector.broadcast %cst_57 : f32 to vector<8x32xf32>
    %167 = arith.mulf %166, %165 : vector<8x32xf32>
    %cst_58 = arith.constant 5.000000e-01 : f32
    %168 = vector.broadcast %cst_58 : f32 to vector<8x32xf32>
    %169 = arith.addf %167, %168 : vector<8x32xf32>
    %170 = arith.mulf %163, %118 : vector<8x32xf32>
    %171 = arith.mulf %158, %164 : vector<8x32xf32>
    %172 = arith.addf %170, %171 : vector<8x32xf32>
    %173 = math.tanh %172 : vector<8x32xf32>
    %174 = arith.mulf %169, %173 : vector<8x32xf32>
    %175 = vector.extract_strided_slice %5 {offsets = [24, 0], sizes = [8, 128], strides = [1, 1]} : vector<64x128xf32> to vector<8x128xf32>
    %176 = arith.truncf %146 : vector<8x32xf32> to vector<8x32xbf16>
    %cst_59 = arith.constant dense<0.000000e+00> : vector<8x128xf32>
    %177 = tpu.matmul %176, %6, %cst_59 {dimension_numbers = #tpu.dot_dimension_numbers<[1], [0], [0], [1], [0, 0, 1, 1], [], []>} : vector<8x32xbf16>, vector<32x128xbf16>, vector<8x128xf32> -> vector<8x128xf32>
    %178 = arith.addf %175, %177 : vector<8x128xf32>
    %179 = math.tanh %178 : vector<8x128xf32>
    %180 = vector.extract_strided_slice %179 {offsets = [0, 0], sizes = [8, 32], strides = [1, 1]} : vector<8x128xf32> to vector<8x32xf32>
    %cst_60 = arith.constant 5.000000e-01 : f32
    %181 = vector.broadcast %cst_60 : f32 to vector<8x32xf32>
    %182 = arith.mulf %181, %180 : vector<8x32xf32>
    %cst_61 = arith.constant 5.000000e-01 : f32
    %183 = vector.broadcast %cst_61 : f32 to vector<8x32xf32>
    %184 = arith.addf %182, %183 : vector<8x32xf32>
    %185 = vector.extract_strided_slice %179 {offsets = [0, 32], sizes = [8, 32], strides = [1, 1]} : vector<8x128xf32> to vector<8x32xf32>
    %cst_62 = arith.constant 5.000000e-01 : f32
    %186 = vector.broadcast %cst_62 : f32 to vector<8x32xf32>
    %187 = arith.mulf %186, %185 : vector<8x32xf32>
    %cst_63 = arith.constant 5.000000e-01 : f32
    %188 = vector.broadcast %cst_63 : f32 to vector<8x32xf32>
    %189 = arith.addf %187, %188 : vector<8x32xf32>
    %190 = vector.extract_strided_slice %179 {offsets = [0, 64], sizes = [8, 32], strides = [1, 1]} : vector<8x128xf32> to vector<8x32xf32>
    %191 = vector.extract_strided_slice %179 {offsets = [0, 96], sizes = [8, 32], strides = [1, 1]} : vector<8x128xf32> to vector<8x32xf32>
    %cst_64 = arith.constant 5.000000e-01 : f32
    %192 = vector.broadcast %cst_64 : f32 to vector<8x32xf32>
    %193 = arith.mulf %192, %191 : vector<8x32xf32>
    %cst_65 = arith.constant 5.000000e-01 : f32
    %194 = vector.broadcast %cst_65 : f32 to vector<8x32xf32>
    %195 = arith.addf %193, %194 : vector<8x32xf32>
    %196 = arith.mulf %189, %144 : vector<8x32xf32>
    %197 = arith.mulf %184, %190 : vector<8x32xf32>
    %198 = arith.addf %196, %197 : vector<8x32xf32>
    %199 = math.tanh %198 : vector<8x32xf32>
    %200 = arith.mulf %195, %199 : vector<8x32xf32>
    %201 = arith.truncf %200 : vector<8x32xf32> to vector<8x32xbf16>
    %cst_66 = arith.constant dense<0.000000e+00> : vector<8x128xf32>
    %202 = tpu.matmul %201, %7, %cst_66 {dimension_numbers = #tpu.dot_dimension_numbers<[1], [0], [0], [1], [0, 0, 1, 1], [], []>} : vector<8x32xbf16>, vector<32x128xbf16>, vector<8x128xf32> -> vector<8x128xf32>
    %203 = arith.truncf %174 : vector<8x32xf32> to vector<8x32xbf16>
    %cst_67 = arith.constant dense<0.000000e+00> : vector<8x128xf32>
    %204 = tpu.matmul %203, %8, %cst_67 {dimension_numbers = #tpu.dot_dimension_numbers<[1], [0], [0], [1], [0, 0, 1, 1], [], []>} : vector<8x32xbf16>, vector<32x128xbf16>, vector<8x128xf32> -> vector<8x128xf32>
    %205 = arith.addf %202, %204 : vector<8x128xf32>
    %206 = arith.addf %205, %11 : vector<8x128xf32>
    %207 = math.tanh %206 : vector<8x128xf32>
    %208 = vector.extract_strided_slice %207 {offsets = [0, 0], sizes = [8, 32], strides = [1, 1]} : vector<8x128xf32> to vector<8x32xf32>
    %cst_68 = arith.constant 5.000000e-01 : f32
    %209 = vector.broadcast %cst_68 : f32 to vector<8x32xf32>
    %210 = arith.mulf %209, %208 : vector<8x32xf32>
    %cst_69 = arith.constant 5.000000e-01 : f32
    %211 = vector.broadcast %cst_69 : f32 to vector<8x32xf32>
    %212 = arith.addf %210, %211 : vector<8x32xf32>
    %213 = vector.extract_strided_slice %207 {offsets = [0, 32], sizes = [8, 32], strides = [1, 1]} : vector<8x128xf32> to vector<8x32xf32>
    %cst_70 = arith.constant 5.000000e-01 : f32
    %214 = vector.broadcast %cst_70 : f32 to vector<8x32xf32>
    %215 = arith.mulf %214, %213 : vector<8x32xf32>
    %cst_71 = arith.constant 5.000000e-01 : f32
    %216 = vector.broadcast %cst_71 : f32 to vector<8x32xf32>
    %217 = arith.addf %215, %216 : vector<8x32xf32>
    %218 = vector.extract_strided_slice %207 {offsets = [0, 64], sizes = [8, 32], strides = [1, 1]} : vector<8x128xf32> to vector<8x32xf32>
    %219 = vector.extract_strided_slice %207 {offsets = [0, 96], sizes = [8, 32], strides = [1, 1]} : vector<8x128xf32> to vector<8x32xf32>
    %cst_72 = arith.constant 5.000000e-01 : f32
    %220 = vector.broadcast %cst_72 : f32 to vector<8x32xf32>
    %221 = arith.mulf %220, %219 : vector<8x32xf32>
    %cst_73 = arith.constant 5.000000e-01 : f32
    %222 = vector.broadcast %cst_73 : f32 to vector<8x32xf32>
    %223 = arith.addf %221, %222 : vector<8x32xf32>
    %224 = arith.mulf %217, %172 : vector<8x32xf32>
    %225 = arith.mulf %212, %218 : vector<8x32xf32>
    %226 = arith.addf %224, %225 : vector<8x32xf32>
    %227 = math.tanh %226 : vector<8x32xf32>
    %228 = arith.mulf %223, %227 : vector<8x32xf32>
    %229 = vector.extract_strided_slice %5 {offsets = [32, 0], sizes = [8, 128], strides = [1, 1]} : vector<64x128xf32> to vector<8x128xf32>
    %230 = arith.truncf %200 : vector<8x32xf32> to vector<8x32xbf16>
    %cst_74 = arith.constant dense<0.000000e+00> : vector<8x128xf32>
    %231 = tpu.matmul %230, %6, %cst_74 {dimension_numbers = #tpu.dot_dimension_numbers<[1], [0], [0], [1], [0, 0, 1, 1], [], []>} : vector<8x32xbf16>, vector<32x128xbf16>, vector<8x128xf32> -> vector<8x128xf32>
    %232 = arith.addf %229, %231 : vector<8x128xf32>
    %233 = math.tanh %232 : vector<8x128xf32>
    %234 = vector.extract_strided_slice %233 {offsets = [0, 0], sizes = [8, 32], strides = [1, 1]} : vector<8x128xf32> to vector<8x32xf32>
    %cst_75 = arith.constant 5.000000e-01 : f32
    %235 = vector.broadcast %cst_75 : f32 to vector<8x32xf32>
    %236 = arith.mulf %235, %234 : vector<8x32xf32>
    %cst_76 = arith.constant 5.000000e-01 : f32
    %237 = vector.broadcast %cst_76 : f32 to vector<8x32xf32>
    %238 = arith.addf %236, %237 : vector<8x32xf32>
    %239 = vector.extract_strided_slice %233 {offsets = [0, 32], sizes = [8, 32], strides = [1, 1]} : vector<8x128xf32> to vector<8x32xf32>
    %cst_77 = arith.constant 5.000000e-01 : f32
    %240 = vector.broadcast %cst_77 : f32 to vector<8x32xf32>
    %241 = arith.mulf %240, %239 : vector<8x32xf32>
    %cst_78 = arith.constant 5.000000e-01 : f32
    %242 = vector.broadcast %cst_78 : f32 to vector<8x32xf32>
    %243 = arith.addf %241, %242 : vector<8x32xf32>
    %244 = vector.extract_strided_slice %233 {offsets = [0, 64], sizes = [8, 32], strides = [1, 1]} : vector<8x128xf32> to vector<8x32xf32>
    %245 = vector.extract_strided_slice %233 {offsets = [0, 96], sizes = [8, 32], strides = [1, 1]} : vector<8x128xf32> to vector<8x32xf32>
    %cst_79 = arith.constant 5.000000e-01 : f32
    %246 = vector.broadcast %cst_79 : f32 to vector<8x32xf32>
    %247 = arith.mulf %246, %245 : vector<8x32xf32>
    %cst_80 = arith.constant 5.000000e-01 : f32
    %248 = vector.broadcast %cst_80 : f32 to vector<8x32xf32>
    %249 = arith.addf %247, %248 : vector<8x32xf32>
    %250 = arith.mulf %243, %198 : vector<8x32xf32>
    %251 = arith.mulf %238, %244 : vector<8x32xf32>
    %252 = arith.addf %250, %251 : vector<8x32xf32>
    %253 = math.tanh %252 : vector<8x32xf32>
    %254 = arith.mulf %249, %253 : vector<8x32xf32>
    %255 = arith.truncf %254 : vector<8x32xf32> to vector<8x32xbf16>
    %cst_81 = arith.constant dense<0.000000e+00> : vector<8x128xf32>
    %256 = tpu.matmul %255, %7, %cst_81 {dimension_numbers = #tpu.dot_dimension_numbers<[1], [0], [0], [1], [0, 0, 1, 1], [], []>} : vector<8x32xbf16>, vector<32x128xbf16>, vector<8x128xf32> -> vector<8x128xf32>
    %257 = arith.truncf %228 : vector<8x32xf32> to vector<8x32xbf16>
    %cst_82 = arith.constant dense<0.000000e+00> : vector<8x128xf32>
    %258 = tpu.matmul %257, %8, %cst_82 {dimension_numbers = #tpu.dot_dimension_numbers<[1], [0], [0], [1], [0, 0, 1, 1], [], []>} : vector<8x32xbf16>, vector<32x128xbf16>, vector<8x128xf32> -> vector<8x128xf32>
    %259 = arith.addf %256, %258 : vector<8x128xf32>
    %260 = arith.addf %259, %11 : vector<8x128xf32>
    %261 = math.tanh %260 : vector<8x128xf32>
    %262 = vector.extract_strided_slice %261 {offsets = [0, 0], sizes = [8, 32], strides = [1, 1]} : vector<8x128xf32> to vector<8x32xf32>
    %cst_83 = arith.constant 5.000000e-01 : f32
    %263 = vector.broadcast %cst_83 : f32 to vector<8x32xf32>
    %264 = arith.mulf %263, %262 : vector<8x32xf32>
    %cst_84 = arith.constant 5.000000e-01 : f32
    %265 = vector.broadcast %cst_84 : f32 to vector<8x32xf32>
    %266 = arith.addf %264, %265 : vector<8x32xf32>
    %267 = vector.extract_strided_slice %261 {offsets = [0, 32], sizes = [8, 32], strides = [1, 1]} : vector<8x128xf32> to vector<8x32xf32>
    %cst_85 = arith.constant 5.000000e-01 : f32
    %268 = vector.broadcast %cst_85 : f32 to vector<8x32xf32>
    %269 = arith.mulf %268, %267 : vector<8x32xf32>
    %cst_86 = arith.constant 5.000000e-01 : f32
    %270 = vector.broadcast %cst_86 : f32 to vector<8x32xf32>
    %271 = arith.addf %269, %270 : vector<8x32xf32>
    %272 = vector.extract_strided_slice %261 {offsets = [0, 64], sizes = [8, 32], strides = [1, 1]} : vector<8x128xf32> to vector<8x32xf32>
    %273 = vector.extract_strided_slice %261 {offsets = [0, 96], sizes = [8, 32], strides = [1, 1]} : vector<8x128xf32> to vector<8x32xf32>
    %cst_87 = arith.constant 5.000000e-01 : f32
    %274 = vector.broadcast %cst_87 : f32 to vector<8x32xf32>
    %275 = arith.mulf %274, %273 : vector<8x32xf32>
    %cst_88 = arith.constant 5.000000e-01 : f32
    %276 = vector.broadcast %cst_88 : f32 to vector<8x32xf32>
    %277 = arith.addf %275, %276 : vector<8x32xf32>
    %278 = arith.mulf %271, %226 : vector<8x32xf32>
    %279 = arith.mulf %266, %272 : vector<8x32xf32>
    %280 = arith.addf %278, %279 : vector<8x32xf32>
    %281 = math.tanh %280 : vector<8x32xf32>
    %282 = arith.mulf %277, %281 : vector<8x32xf32>
    %283 = vector.extract_strided_slice %5 {offsets = [40, 0], sizes = [8, 128], strides = [1, 1]} : vector<64x128xf32> to vector<8x128xf32>
    %284 = arith.truncf %254 : vector<8x32xf32> to vector<8x32xbf16>
    %cst_89 = arith.constant dense<0.000000e+00> : vector<8x128xf32>
    %285 = tpu.matmul %284, %6, %cst_89 {dimension_numbers = #tpu.dot_dimension_numbers<[1], [0], [0], [1], [0, 0, 1, 1], [], []>} : vector<8x32xbf16>, vector<32x128xbf16>, vector<8x128xf32> -> vector<8x128xf32>
    %286 = arith.addf %283, %285 : vector<8x128xf32>
    %287 = math.tanh %286 : vector<8x128xf32>
    %288 = vector.extract_strided_slice %287 {offsets = [0, 0], sizes = [8, 32], strides = [1, 1]} : vector<8x128xf32> to vector<8x32xf32>
    %cst_90 = arith.constant 5.000000e-01 : f32
    %289 = vector.broadcast %cst_90 : f32 to vector<8x32xf32>
    %290 = arith.mulf %289, %288 : vector<8x32xf32>
    %cst_91 = arith.constant 5.000000e-01 : f32
    %291 = vector.broadcast %cst_91 : f32 to vector<8x32xf32>
    %292 = arith.addf %290, %291 : vector<8x32xf32>
    %293 = vector.extract_strided_slice %287 {offsets = [0, 32], sizes = [8, 32], strides = [1, 1]} : vector<8x128xf32> to vector<8x32xf32>
    %cst_92 = arith.constant 5.000000e-01 : f32
    %294 = vector.broadcast %cst_92 : f32 to vector<8x32xf32>
    %295 = arith.mulf %294, %293 : vector<8x32xf32>
    %cst_93 = arith.constant 5.000000e-01 : f32
    %296 = vector.broadcast %cst_93 : f32 to vector<8x32xf32>
    %297 = arith.addf %295, %296 : vector<8x32xf32>
    %298 = vector.extract_strided_slice %287 {offsets = [0, 64], sizes = [8, 32], strides = [1, 1]} : vector<8x128xf32> to vector<8x32xf32>
    %299 = vector.extract_strided_slice %287 {offsets = [0, 96], sizes = [8, 32], strides = [1, 1]} : vector<8x128xf32> to vector<8x32xf32>
    %cst_94 = arith.constant 5.000000e-01 : f32
    %300 = vector.broadcast %cst_94 : f32 to vector<8x32xf32>
    %301 = arith.mulf %300, %299 : vector<8x32xf32>
    %cst_95 = arith.constant 5.000000e-01 : f32
    %302 = vector.broadcast %cst_95 : f32 to vector<8x32xf32>
    %303 = arith.addf %301, %302 : vector<8x32xf32>
    %304 = arith.mulf %297, %252 : vector<8x32xf32>
    %305 = arith.mulf %292, %298 : vector<8x32xf32>
    %306 = arith.addf %304, %305 : vector<8x32xf32>
    %307 = math.tanh %306 : vector<8x32xf32>
    %308 = arith.mulf %303, %307 : vector<8x32xf32>
    %309 = arith.truncf %308 : vector<8x32xf32> to vector<8x32xbf16>
    %cst_96 = arith.constant dense<0.000000e+00> : vector<8x128xf32>
    %310 = tpu.matmul %309, %7, %cst_96 {dimension_numbers = #tpu.dot_dimension_numbers<[1], [0], [0], [1], [0, 0, 1, 1], [], []>} : vector<8x32xbf16>, vector<32x128xbf16>, vector<8x128xf32> -> vector<8x128xf32>
    %311 = arith.truncf %282 : vector<8x32xf32> to vector<8x32xbf16>
    %cst_97 = arith.constant dense<0.000000e+00> : vector<8x128xf32>
    %312 = tpu.matmul %311, %8, %cst_97 {dimension_numbers = #tpu.dot_dimension_numbers<[1], [0], [0], [1], [0, 0, 1, 1], [], []>} : vector<8x32xbf16>, vector<32x128xbf16>, vector<8x128xf32> -> vector<8x128xf32>
    %313 = arith.addf %310, %312 : vector<8x128xf32>
    %314 = arith.addf %313, %11 : vector<8x128xf32>
    %315 = math.tanh %314 : vector<8x128xf32>
    %316 = vector.extract_strided_slice %315 {offsets = [0, 0], sizes = [8, 32], strides = [1, 1]} : vector<8x128xf32> to vector<8x32xf32>
    %cst_98 = arith.constant 5.000000e-01 : f32
    %317 = vector.broadcast %cst_98 : f32 to vector<8x32xf32>
    %318 = arith.mulf %317, %316 : vector<8x32xf32>
    %cst_99 = arith.constant 5.000000e-01 : f32
    %319 = vector.broadcast %cst_99 : f32 to vector<8x32xf32>
    %320 = arith.addf %318, %319 : vector<8x32xf32>
    %321 = vector.extract_strided_slice %315 {offsets = [0, 32], sizes = [8, 32], strides = [1, 1]} : vector<8x128xf32> to vector<8x32xf32>
    %cst_100 = arith.constant 5.000000e-01 : f32
    %322 = vector.broadcast %cst_100 : f32 to vector<8x32xf32>
    %323 = arith.mulf %322, %321 : vector<8x32xf32>
    %cst_101 = arith.constant 5.000000e-01 : f32
    %324 = vector.broadcast %cst_101 : f32 to vector<8x32xf32>
    %325 = arith.addf %323, %324 : vector<8x32xf32>
    %326 = vector.extract_strided_slice %315 {offsets = [0, 64], sizes = [8, 32], strides = [1, 1]} : vector<8x128xf32> to vector<8x32xf32>
    %327 = vector.extract_strided_slice %315 {offsets = [0, 96], sizes = [8, 32], strides = [1, 1]} : vector<8x128xf32> to vector<8x32xf32>
    %cst_102 = arith.constant 5.000000e-01 : f32
    %328 = vector.broadcast %cst_102 : f32 to vector<8x32xf32>
    %329 = arith.mulf %328, %327 : vector<8x32xf32>
    %cst_103 = arith.constant 5.000000e-01 : f32
    %330 = vector.broadcast %cst_103 : f32 to vector<8x32xf32>
    %331 = arith.addf %329, %330 : vector<8x32xf32>
    %332 = arith.mulf %325, %280 : vector<8x32xf32>
    %333 = arith.mulf %320, %326 : vector<8x32xf32>
    %334 = arith.addf %332, %333 : vector<8x32xf32>
    %335 = math.tanh %334 : vector<8x32xf32>
    %336 = arith.mulf %331, %335 : vector<8x32xf32>
    %337 = vector.extract_strided_slice %5 {offsets = [48, 0], sizes = [8, 128], strides = [1, 1]} : vector<64x128xf32> to vector<8x128xf32>
    %338 = arith.truncf %308 : vector<8x32xf32> to vector<8x32xbf16>
    %cst_104 = arith.constant dense<0.000000e+00> : vector<8x128xf32>
    %339 = tpu.matmul %338, %6, %cst_104 {dimension_numbers = #tpu.dot_dimension_numbers<[1], [0], [0], [1], [0, 0, 1, 1], [], []>} : vector<8x32xbf16>, vector<32x128xbf16>, vector<8x128xf32> -> vector<8x128xf32>
    %340 = arith.addf %337, %339 : vector<8x128xf32>
    %341 = math.tanh %340 : vector<8x128xf32>
    %342 = vector.extract_strided_slice %341 {offsets = [0, 0], sizes = [8, 32], strides = [1, 1]} : vector<8x128xf32> to vector<8x32xf32>
    %cst_105 = arith.constant 5.000000e-01 : f32
    %343 = vector.broadcast %cst_105 : f32 to vector<8x32xf32>
    %344 = arith.mulf %343, %342 : vector<8x32xf32>
    %cst_106 = arith.constant 5.000000e-01 : f32
    %345 = vector.broadcast %cst_106 : f32 to vector<8x32xf32>
    %346 = arith.addf %344, %345 : vector<8x32xf32>
    %347 = vector.extract_strided_slice %341 {offsets = [0, 32], sizes = [8, 32], strides = [1, 1]} : vector<8x128xf32> to vector<8x32xf32>
    %cst_107 = arith.constant 5.000000e-01 : f32
    %348 = vector.broadcast %cst_107 : f32 to vector<8x32xf32>
    %349 = arith.mulf %348, %347 : vector<8x32xf32>
    %cst_108 = arith.constant 5.000000e-01 : f32
    %350 = vector.broadcast %cst_108 : f32 to vector<8x32xf32>
    %351 = arith.addf %349, %350 : vector<8x32xf32>
    %352 = vector.extract_strided_slice %341 {offsets = [0, 64], sizes = [8, 32], strides = [1, 1]} : vector<8x128xf32> to vector<8x32xf32>
    %353 = vector.extract_strided_slice %341 {offsets = [0, 96], sizes = [8, 32], strides = [1, 1]} : vector<8x128xf32> to vector<8x32xf32>
    %cst_109 = arith.constant 5.000000e-01 : f32
    %354 = vector.broadcast %cst_109 : f32 to vector<8x32xf32>
    %355 = arith.mulf %354, %353 : vector<8x32xf32>
    %cst_110 = arith.constant 5.000000e-01 : f32
    %356 = vector.broadcast %cst_110 : f32 to vector<8x32xf32>
    %357 = arith.addf %355, %356 : vector<8x32xf32>
    %358 = arith.mulf %351, %306 : vector<8x32xf32>
    %359 = arith.mulf %346, %352 : vector<8x32xf32>
    %360 = arith.addf %358, %359 : vector<8x32xf32>
    %361 = math.tanh %360 : vector<8x32xf32>
    %362 = arith.mulf %357, %361 : vector<8x32xf32>
    %363 = arith.truncf %362 : vector<8x32xf32> to vector<8x32xbf16>
    %cst_111 = arith.constant dense<0.000000e+00> : vector<8x128xf32>
    %364 = tpu.matmul %363, %7, %cst_111 {dimension_numbers = #tpu.dot_dimension_numbers<[1], [0], [0], [1], [0, 0, 1, 1], [], []>} : vector<8x32xbf16>, vector<32x128xbf16>, vector<8x128xf32> -> vector<8x128xf32>
    %365 = arith.truncf %336 : vector<8x32xf32> to vector<8x32xbf16>
    %cst_112 = arith.constant dense<0.000000e+00> : vector<8x128xf32>
    %366 = tpu.matmul %365, %8, %cst_112 {dimension_numbers = #tpu.dot_dimension_numbers<[1], [0], [0], [1], [0, 0, 1, 1], [], []>} : vector<8x32xbf16>, vector<32x128xbf16>, vector<8x128xf32> -> vector<8x128xf32>
    %367 = arith.addf %364, %366 : vector<8x128xf32>
    %368 = arith.addf %367, %11 : vector<8x128xf32>
    %369 = math.tanh %368 : vector<8x128xf32>
    %370 = vector.extract_strided_slice %369 {offsets = [0, 0], sizes = [8, 32], strides = [1, 1]} : vector<8x128xf32> to vector<8x32xf32>
    %cst_113 = arith.constant 5.000000e-01 : f32
    %371 = vector.broadcast %cst_113 : f32 to vector<8x32xf32>
    %372 = arith.mulf %371, %370 : vector<8x32xf32>
    %cst_114 = arith.constant 5.000000e-01 : f32
    %373 = vector.broadcast %cst_114 : f32 to vector<8x32xf32>
    %374 = arith.addf %372, %373 : vector<8x32xf32>
    %375 = vector.extract_strided_slice %369 {offsets = [0, 32], sizes = [8, 32], strides = [1, 1]} : vector<8x128xf32> to vector<8x32xf32>
    %cst_115 = arith.constant 5.000000e-01 : f32
    %376 = vector.broadcast %cst_115 : f32 to vector<8x32xf32>
    %377 = arith.mulf %376, %375 : vector<8x32xf32>
    %cst_116 = arith.constant 5.000000e-01 : f32
    %378 = vector.broadcast %cst_116 : f32 to vector<8x32xf32>
    %379 = arith.addf %377, %378 : vector<8x32xf32>
    %380 = vector.extract_strided_slice %369 {offsets = [0, 64], sizes = [8, 32], strides = [1, 1]} : vector<8x128xf32> to vector<8x32xf32>
    %381 = vector.extract_strided_slice %369 {offsets = [0, 96], sizes = [8, 32], strides = [1, 1]} : vector<8x128xf32> to vector<8x32xf32>
    %cst_117 = arith.constant 5.000000e-01 : f32
    %382 = vector.broadcast %cst_117 : f32 to vector<8x32xf32>
    %383 = arith.mulf %382, %381 : vector<8x32xf32>
    %cst_118 = arith.constant 5.000000e-01 : f32
    %384 = vector.broadcast %cst_118 : f32 to vector<8x32xf32>
    %385 = arith.addf %383, %384 : vector<8x32xf32>
    %386 = arith.mulf %379, %334 : vector<8x32xf32>
    %387 = arith.mulf %374, %380 : vector<8x32xf32>
    %388 = arith.addf %386, %387 : vector<8x32xf32>
    %389 = math.tanh %388 : vector<8x32xf32>
    %390 = arith.mulf %385, %389 : vector<8x32xf32>
    %391 = vector.extract_strided_slice %5 {offsets = [56, 0], sizes = [8, 128], strides = [1, 1]} : vector<64x128xf32> to vector<8x128xf32>
    %392 = arith.truncf %362 : vector<8x32xf32> to vector<8x32xbf16>
    %cst_119 = arith.constant dense<0.000000e+00> : vector<8x128xf32>
    %393 = tpu.matmul %392, %6, %cst_119 {dimension_numbers = #tpu.dot_dimension_numbers<[1], [0], [0], [1], [0, 0, 1, 1], [], []>} : vector<8x32xbf16>, vector<32x128xbf16>, vector<8x128xf32> -> vector<8x128xf32>
    %394 = arith.addf %391, %393 : vector<8x128xf32>
    %395 = math.tanh %394 : vector<8x128xf32>
    %396 = vector.extract_strided_slice %395 {offsets = [0, 0], sizes = [8, 32], strides = [1, 1]} : vector<8x128xf32> to vector<8x32xf32>
    %cst_120 = arith.constant 5.000000e-01 : f32
    %397 = vector.broadcast %cst_120 : f32 to vector<8x32xf32>
    %398 = arith.mulf %397, %396 : vector<8x32xf32>
    %cst_121 = arith.constant 5.000000e-01 : f32
    %399 = vector.broadcast %cst_121 : f32 to vector<8x32xf32>
    %400 = arith.addf %398, %399 : vector<8x32xf32>
    %401 = vector.extract_strided_slice %395 {offsets = [0, 32], sizes = [8, 32], strides = [1, 1]} : vector<8x128xf32> to vector<8x32xf32>
    %cst_122 = arith.constant 5.000000e-01 : f32
    %402 = vector.broadcast %cst_122 : f32 to vector<8x32xf32>
    %403 = arith.mulf %402, %401 : vector<8x32xf32>
    %cst_123 = arith.constant 5.000000e-01 : f32
    %404 = vector.broadcast %cst_123 : f32 to vector<8x32xf32>
    %405 = arith.addf %403, %404 : vector<8x32xf32>
    %406 = vector.extract_strided_slice %395 {offsets = [0, 64], sizes = [8, 32], strides = [1, 1]} : vector<8x128xf32> to vector<8x32xf32>
    %407 = vector.extract_strided_slice %395 {offsets = [0, 96], sizes = [8, 32], strides = [1, 1]} : vector<8x128xf32> to vector<8x32xf32>
    %cst_124 = arith.constant 5.000000e-01 : f32
    %408 = vector.broadcast %cst_124 : f32 to vector<8x32xf32>
    %409 = arith.mulf %408, %407 : vector<8x32xf32>
    %cst_125 = arith.constant 5.000000e-01 : f32
    %410 = vector.broadcast %cst_125 : f32 to vector<8x32xf32>
    %411 = arith.addf %409, %410 : vector<8x32xf32>
    %412 = arith.mulf %405, %360 : vector<8x32xf32>
    %413 = arith.mulf %400, %406 : vector<8x32xf32>
    %414 = arith.addf %412, %413 : vector<8x32xf32>
    %415 = math.tanh %414 : vector<8x32xf32>
    %416 = arith.mulf %411, %415 : vector<8x32xf32>
    %417 = arith.truncf %416 : vector<8x32xf32> to vector<8x32xbf16>
    %cst_126 = arith.constant dense<0.000000e+00> : vector<8x128xf32>
    %418 = tpu.matmul %417, %7, %cst_126 {dimension_numbers = #tpu.dot_dimension_numbers<[1], [0], [0], [1], [0, 0, 1, 1], [], []>} : vector<8x32xbf16>, vector<32x128xbf16>, vector<8x128xf32> -> vector<8x128xf32>
    %419 = arith.truncf %390 : vector<8x32xf32> to vector<8x32xbf16>
    %cst_127 = arith.constant dense<0.000000e+00> : vector<8x128xf32>
    %420 = tpu.matmul %419, %8, %cst_127 {dimension_numbers = #tpu.dot_dimension_numbers<[1], [0], [0], [1], [0, 0, 1, 1], [], []>} : vector<8x32xbf16>, vector<32x128xbf16>, vector<8x128xf32> -> vector<8x128xf32>
    %421 = arith.addf %418, %420 : vector<8x128xf32>
    %422 = arith.addf %421, %11 : vector<8x128xf32>
    %423 = math.tanh %422 : vector<8x128xf32>
    %424 = vector.extract_strided_slice %423 {offsets = [0, 0], sizes = [8, 32], strides = [1, 1]} : vector<8x128xf32> to vector<8x32xf32>
    %cst_128 = arith.constant 5.000000e-01 : f32
    %425 = vector.broadcast %cst_128 : f32 to vector<8x32xf32>
    %426 = arith.mulf %425, %424 : vector<8x32xf32>
    %cst_129 = arith.constant 5.000000e-01 : f32
    %427 = vector.broadcast %cst_129 : f32 to vector<8x32xf32>
    %428 = arith.addf %426, %427 : vector<8x32xf32>
    %429 = vector.extract_strided_slice %423 {offsets = [0, 32], sizes = [8, 32], strides = [1, 1]} : vector<8x128xf32> to vector<8x32xf32>
    %cst_130 = arith.constant 5.000000e-01 : f32
    %430 = vector.broadcast %cst_130 : f32 to vector<8x32xf32>
    %431 = arith.mulf %430, %429 : vector<8x32xf32>
    %cst_131 = arith.constant 5.000000e-01 : f32
    %432 = vector.broadcast %cst_131 : f32 to vector<8x32xf32>
    %433 = arith.addf %431, %432 : vector<8x32xf32>
    %434 = vector.extract_strided_slice %423 {offsets = [0, 64], sizes = [8, 32], strides = [1, 1]} : vector<8x128xf32> to vector<8x32xf32>
    %435 = vector.extract_strided_slice %423 {offsets = [0, 96], sizes = [8, 32], strides = [1, 1]} : vector<8x128xf32> to vector<8x32xf32>
    %cst_132 = arith.constant 5.000000e-01 : f32
    %436 = vector.broadcast %cst_132 : f32 to vector<8x32xf32>
    %437 = arith.mulf %436, %435 : vector<8x32xf32>
    %cst_133 = arith.constant 5.000000e-01 : f32
    %438 = vector.broadcast %cst_133 : f32 to vector<8x32xf32>
    %439 = arith.addf %437, %438 : vector<8x32xf32>
    %440 = arith.mulf %433, %388 : vector<8x32xf32>
    %441 = arith.mulf %428, %434 : vector<8x32xf32>
    %442 = arith.addf %440, %441 : vector<8x32xf32>
    %443 = math.tanh %442 : vector<8x32xf32>
    %444 = arith.mulf %439, %443 : vector<8x32xf32>
    %c0_134 = arith.constant 0 : index
    %c0_135 = arith.constant 0 : index
    %445 = vector.load %arg7[%c0_134, %c0_135] : memref<32x128xf32, #tpu.memory_space<vmem>>, vector<32x128xf32>
    %cst_136 = arith.constant dense<0.000000e+00> : vector<8x128xf32>
    %446 = tpu.matmul %444, %445, %cst_136 {dimension_numbers = #tpu.dot_dimension_numbers<[1], [0], [0], [1], [0, 0, 1, 1], [], []>} : vector<8x32xf32>, vector<32x128xf32>, vector<8x128xf32> -> vector<8x128xf32>
    %c0_137 = arith.constant 0 : index
    %c0_138 = arith.constant 0 : index
    %447 = vector.load %arg8[%c0_137, %c0_138] : memref<1x128xf32, #tpu.memory_space<vmem>>, vector<1x128xf32>
    %448 = vector.broadcast %447 : vector<1x128xf32> to vector<8x128xf32>
    %449 = arith.addf %446, %448 : vector<8x128xf32>
    %c0_139 = arith.constant 0 : index
    %c0_140 = arith.constant 0 : index
    %450 = vector.load %arg9[%c0_139, %c0_140] : memref<8x128xf32, #tpu.memory_space<vmem>>, vector<8x128xf32>
    tpu.vector_store %arg9[%c0_139, %c0_140], %449 {strides = array<i32>} : memref<8x128xf32, #tpu.memory_space<vmem>>, vector<8x128xf32>,
    return
  }
}

</mosaic_0001>

<bundles_post_ra>
// kernel: lstm_model_forward.1
= control target key start
LH: loop header
LB: loop body
LE: loop exit
PB: predicated region body
PF: predicated region fallthrough
CT: control target
= control target key end

     0   :  { %vm47_vm0 = vcmask 130048   ;;  %v1091_v5 = vmov 0   ;;  %s1092_s19 = smov 64   ;;  %s1093_s20 = smov 32   ;;  %vm141_vm1 = vcmask 261120   ;;  %s1409_s2 = inlined_call_operand.vmem [shape: bf16[32,128], index: 2, kind: input, shape index: {}]   ;;  %s1410_s1 = inlined_call_operand.vmem [shape: f32[16,128], index: 1, kind: input, shape index: {}]   ;;  %s1411_s0 = inlined_call_operand.vmem [shape: f32[64,16], index: 0, kind: input, shape index: {}]   ;;  %s1412_s3 = inlined_call_operand.vmem [shape: f32[1,128], index: 3, kind: input, shape index: {}]   ;;  %s1413_s5 = inlined_call_operand.vmem [shape: bf16[32,128], index: 5, kind: input, shape index: {}]   ;;  %s1414_s4 = inlined_call_operand.vmem [shape: bf16[32,128], index: 4, kind: input, shape index: {}]   ;;  %s1415_s6 = inlined_call_operand.vmem [shape: f32[1,128], index: 6, kind: input, shape index: {}]   ;;  %s1416_s7 = inlined_call_operand.vmem [shape: f32[32,128], index: 7, kind: input, shape index: {}]   ;;  %s1417_s8 = inlined_call_operand.vmem [shape: f32[1,128], index: 8, kind: input, shape index: {}]   ;;  %s1418_s9 = inlined_call_operand.vmem [shape: f32[8,128], index: 9, kind: output, shape index: {}]  }
   0x1   :  { %v1147_v0 = vld [vmem:[%s1409_s2 + $0x8] sm:$0xff]  ;;  %v41_v2 = vld [vmem:[%s1410_s1] sm:$0xff] }
   0x2   :  { %v42_v1 = vld [vmem:[%s1410_s1 + $0x8] sm:$0xff]  ;;  %v33_v3 = vld [vmem:[%s1411_s0] sm:$0xff]  ;;  %151 = vmatpush.bf16.msra.mxu1 %v1147_v0 }
   0x3   :  { %86 = vmatpush.msra.mxu0 %v42_v1  ;;  %v1162_v4 = vld [vmem:[%s1409_s2] sm:$0xff]  ;;  %v1187_v21 = vld [vmem:[%s1413_s5 + $0x8] sm:$0xff] }
   0x4   :  { %v1175_v6 = vld [vmem:[%s1412_s3] ss:$0 sm:$0xff]  ;;  %v1192_v22 = vld [vmem:[%s1414_s4 + $0x8] sm:$0xff]  ;;  %198 = vmatpush.bf16.msra.mxu2 %v1187_v21 }
   0x5   :  { %87 = vmatpush.msra.mxu0 %v41_v2  ;;  %v34_v23 = vld [vmem:[%s1411_s0 + $0x8] sm:$0xff]  ;;  %v1201_v24 = vld [vmem:[%s1413_s5] sm:$0xff]  ;;  %229 = vmatpush.bf16.msra.mxu3 %v1192_v22 }
   0x6   :  { %960 = vmatmul.msk.f32.vlgmr.msra.gmra.mxu0 %vm47_vm0, %v33_v3  ;;  %152 = vmatpush.bf16.msra.mxu1 %v1162_v4  ;;  %v1207_v25 = vld [vmem:[%s1414_s4] sm:$0xff]  ;;  %v35_v3 = vld [vmem:[%s1411_s0 + $0x10] sm:$0xff] }
   0x7   :  { %548 = vmatpush.bf16.msrb.mxu0 %v1147_v0  ;;  %v1230_v33 = vld [vmem:[%s1415_s6] ss:$0 sm:$0xff] }
   0x8   :  { %199 = vmatpush.bf16.msra.mxu2 %v1201_v24 }
   0x9   :  { %153 = vmatmul.bf16.vlgmr.msra.gmra.mxu1 %v1091_v5  ;;  %230 = vmatpush.bf16.msra.mxu3 %v1207_v25 }
   0xa   :  { %263 = vmatpush.bf16.msrb.mxu1 %v1147_v0 }
   0xb   :  { %549 = vmatpush.bf16.msrb.mxu0 %v1162_v4  ;;  %200 = vmatmul.bf16.vlgmr.msra.gmra.mxu2 %v1091_v5 }
   0xc   :  { %305 = vmatpush.bf16.msrb.mxu2 %v1187_v21 }
   0xd   :  { %324 = vmatpush.bf16.msrb.mxu3 %v1192_v22 }
   0xe   :  { %264 = vmatpush.bf16.msrb.mxu1 %v1162_v4  ;;  %961 = vmatmul.msk.f32.gmra.mxu0 %vm47_vm0, %v34_v23 }
   0xf   :  { %685 = vmatpush.bf16.msra.mxu0 %v1187_v21 }
  0x10   :  { %306 = vmatpush.bf16.msrb.mxu2 %v1201_v24 }
  0x11   :  { %325 = vmatpush.bf16.msrb.mxu3 %v1207_v25 }
  0x12   :  { %358 = vmatpush.bf16.msra.mxu1 %v1147_v0 }
  0x13   :  { %686 = vmatpush.bf16.msra.mxu0 %v1201_v24 }
  0x14   :  { %400 = vmatpush.bf16.msra.mxu2 %v1187_v21 }
  0x16   :  { %359 = vmatpush.bf16.msra.mxu1 %v1162_v4  ;;  %962 = vmatmul.msk.f32.gmra.mxu0 %vm47_vm0, %v35_v3 }
  0x18   :  { %401 = vmatpush.bf16.msra.mxu2 %v1201_v24 }
  0x83   :  { %v89_v7 = vpop.f32.mrf.mxu0 }
  0x84   :  { %v90_v8 = vadd.f32 %v1175_v6, %v89_v7 }
  0x86   :  { %v154_v9 = vpop.f32.mrf.mxu1 }
  0x87   :  { %v158_v10 = vadd.f32 %v154_v9, %v90_v8 }
  0x89   :  { %1027 = vtanh.f32 %v158_v10 }
  0x8b   :  { %v92_v36 = vpop.f32.mrf.mxu0 }
  0x8c   :  { %v93_v39 = vadd.f32 %v1175_v6, %v92_v36 }
  0x8e   :  { %v156_v11 = vpop.f32.mrf.mxu1  ;;  %v201_v29 = vpop.f32.mrf.mxu2 }
  0x8f   :  { %v1028_v12 = vpop.eup %1027 }
  0x90   :  { %164 = vrot.lane.b32.xlu0 %v1028_v12, %s1092_s19  ;;  %v160_v13 = vmul.f32 0.5, %v1028_v12 }
  0x92   :  { %v161_v14 = vadd.f32 0.5, %v160_v13 }
  0x93   :  { %v95_v8 = vpop.f32.mrf.mxu0 }
  0x94   :  { %v162_v17 = vmul.f32 0.0, %v161_v14  ;;  %v96_v9 = vadd.f32 %v1175_v6, %v95_v8 }
  0x96   :  { %v203_v31 = vpop.f32.mrf.mxu2 }
 0x102   :  { %v165_v15 = vpop.permute.xlu0 %164 }
 0x103   :  { %v167_v16 = vmul.f32 %v165_v15, %v161_v14 }
 0x105   :  { %169 = vrot.lane.b32.xlu0 %v167_v16, %s1093_s20 }
 0x177   :  { %v170_v18 = vpop.permute.xlu0 %169 }
 0x178   :  { %v1180_v19 = vadd.f32 %v170_v18, %v162_v17 }
 0x17a   :  { %1029 = vtanh.f32 %v1180_v19 }
 0x180   :  { %v1030_v20 = vpop.eup %1029 }
 0x181   :  { %175 = vrot.lane.b32.xlu1 %v1030_v20, %s1092_s19 }
 0x1f3   :  { %v176_v26 = vpop.permute.xlu1 %175 }
 0x1f4   :  { %v178_v27 = vmul.f32 %v176_v26, %v161_v14 }
 0x1f6   :  { %v179_v28 = vpack.c.bf16 %v178_v27, %v178_v27 }
 0x1f8   :  { %206 = vrot.lane.b32.xlu1 %v179_v28, %s1093_s20 }
 0x26a   :  { %v207_v30 = vpop.permute.xlu1 %206 }
 0x26b   :  { %992 = vmatmul.msk.bf16.vlgmr.msra.gmra.mxu3 %vm141_vm1, %v207_v30  ;;  %993 = vmatmul.msk.bf16.vlgmr.msrb.gmra.mxu1 %vm141_vm1, %v207_v30 }
 0x26c   :  { %453 = vmatpush.bf16.msrb.mxu1 %v1147_v0  ;;  %419 = vmatpush.bf16.msra.mxu3 %v1192_v22 }
 0x270   :  { %454 = vmatpush.bf16.msrb.mxu1 %v1162_v4  ;;  %420 = vmatpush.bf16.msra.mxu3 %v1207_v25 }
 0x2e8   :  { %v266_v32 = vpop.f32.mrf.mxu1 }
 0x2e9   :  { %v270_v41 = vadd.f32 %v266_v32, %v93_v39 }
 0x2ee   :  { %v232_v34 = vpop.f32.mrf.mxu3 }
 0x2ef   :  { %v233_v35 = vadd.f32 %v232_v34, %v201_v29 }
 0x2f0   :  { %v268_v37 = vpop.f32.mrf.mxu1 }
 0x2f1   :  { %v236_v38 = vadd.f32 %v1230_v33, %v233_v35 }
 0x2f3   :  { %1031 = vtanh.f32 %v236_v38 }
 0x2f4   :  { %1033 = vtanh.f32 %v270_v41 }
 0x2f6   :  { %v234_v40 = vpop.f32.mrf.mxu3 }
 0x2f9   :  { %v1032_v42 = vpop.eup %1031 }
 0x2fa   :  { %242 = vrot.lane.b32.xlu2 %v1032_v42, %s1092_s19  ;;  %v1034_v43 = vpop.eup %1033  ;;  %v238_v44 = vmul.f32 0.5, %v1032_v42  ;;  %v36_v42 = vld [vmem:[%s1411_s0 + $0x18] sm:$0xff] }
 0x2fb   :  { %v272_v48 = vmul.f32 0.5, %v1034_v43  ;;  %963 = vmatmul.msk.f32.gmra.mxu0 %vm47_vm0, %v36_v42 }
 0x2fc   :  { %v239_v45 = vadd.f32 0.5, %v238_v44 }
 0x2fd   :  { %v273_v49 = vadd.f32 0.5, %v272_v48 }
 0x2fe   :  { %v240_v52 = vmul.f32 0.0, %v239_v45 }
 0x2ff   :  { %v274_v55 = vmul.f32 %v273_v49, %v1180_v19 }
 0x302   :  { %276 = vrot.lane.b32.xlu2 %v1034_v43, %s1092_s19 }
 0x354   :  { %v243_v46 = vpop.permute.xlu2 %242 }
 0x355   :  { %v245_v47 = vmul.f32 %v243_v46, %v239_v45 }
 0x357   :  { %247 = vrot.lane.b32.xlu0 %v245_v47, %s1093_s20 }
 0x35c   :  { %v277_v50 = vpop.permute.xlu2 %276 }
 0x35d   :  { %v279_v51 = vmul.f32 %v277_v50, %v273_v49 }
 0x35f   :  { %281 = vrot.lane.b32.xlu1 %v279_v51, %s1093_s20 }
 0x378   :  { %v98_v51 = vpop.f32.mrf.mxu0 }
 0x3c9   :  { %v248_v53 = vpop.permute.xlu0 %247 }
 0x3ca   :  { %v250_v54 = vadd.f32 %v248_v53, %v240_v52  ;;  %v99_v52 = vadd.f32 %v1175_v6, %v98_v51 }
 0x3cc   :  { %1035 = vtanh.f32 %v250_v54 }
 0x3d1   :  { %v282_v56 = vpop.permute.xlu1 %281 }
 0x3d2   :  { %v1036_v57 = vpop.eup %1035  ;;  %v284_v58 = vadd.f32 %v282_v56, %v274_v55 }
 0x3d3   :  { %253 = vrot.lane.b32.xlu2 %v1036_v57, %s1092_s19 }
 0x3d4   :  { %1037 = vtanh.f32 %v284_v58 }
 0x3da   :  { %v1038_v59 = vpop.eup %1037 }
 0x3db   :  { %287 = vrot.lane.b32.xlu0 %v1038_v59, %s1092_s19 }
 0x42d   :  { %v254_v60 = vpop.permute.xlu2 %253 }
 0x42e   :  { %v256_v61 = vmul.f32 %v254_v60, %v239_v45 }
 0x430   :  { %v292_v62 = vpack.c.bf16 %v256_v61, %v256_v61 }
 0x432   :  { %294 = vrot.lane.b32.xlu1 %v292_v62, %s1093_s20 }
 0x44d   :  { %v288_v63 = vpop.permute.xlu0 %287 }
 0x44e   :  { %v290_v1 = vmul.f32 %v288_v63, %v273_v49 }
 0x450   :  { %v291_v2 = vpack.c.bf16 %v290_v1, %v290_v1 }
 0x452   :  { %313 = vrot.lane.b32.xlu2 %v291_v2, %s1093_s20 }
 0x4a4   :  { %v295_v5 = vpop.permute.xlu1 %294 }
 0x4a5   :  { %994 = vmatmul.msk.bf16.vlgmr.msrb.gmra.mxu2 %vm141_vm1, %v295_v5 }
 0x4a6   :  { %495 = vmatpush.bf16.msrb.mxu2 %v1187_v21 }
 0x4aa   :  { %496 = vmatpush.bf16.msrb.mxu2 %v1201_v24 }
 0x4ac   :  { %v314_v7 = vpop.permute.xlu2 %313 }
 0x4ad   :  { %995 = vmatmul.msk.bf16.vlgmr.msrb.gmra.mxu3 %vm141_vm1, %v314_v7  ;;  %996 = vmatmul.msk.bf16.vlgmr.msra.gmra.mxu1 %vm141_vm1, %v314_v7 }
 0x4ae   :  { %514 = vmatpush.bf16.msrb.mxu3 %v1192_v22  ;;  %590 = vmatpush.bf16.msra.mxu1 %v1187_v21 }
 0x4b2   :  { %515 = vmatpush.bf16.msrb.mxu3 %v1207_v25  ;;  %591 = vmatpush.bf16.msra.mxu1 %v1201_v24 }
 0x528   :  { %v308_v10 = vpop.f32.mrf.mxu2 }
 0x52a   :  { %v361_v11 = vpop.f32.mrf.mxu1 }
 0x52b   :  { %v365_v12 = vadd.f32 %v361_v11, %v96_v9 }
 0x52d   :  { %1039 = vtanh.f32 %v365_v12 }
 0x530   :  { %v310_v13 = vpop.f32.mrf.mxu2  ;;  %v327_v14 = vpop.f32.mrf.mxu3 }
 0x531   :  { %v328_v15 = vadd.f32 %v327_v14, %v308_v10 }
 0x532   :  { %v363_v16 = vpop.f32.mrf.mxu1 }
 0x533   :  { %v1040_v17 = vpop.eup %1039  ;;  %v331_v18 = vadd.f32 %v1230_v33, %v328_v15 }
 0x534   :  { %371 = vrot.lane.b32.xlu1 %v1040_v17, %s1092_s19  ;;  %v367_v23 = vmul.f32 0.5, %v1040_v17 }
 0x535   :  { %1041 = vtanh.f32 %v331_v18 }
 0x536   :  { %v368_v26 = vadd.f32 0.5, %v367_v23 }
 0x538   :  { %v329_v19 = vpop.f32.mrf.mxu3  ;;  %v369_v38 = vmul.f32 %v368_v26, %v284_v58 }
 0x539   :  { %v37_v19 = vld [vmem:[%s1411_s0 + $0x20] sm:$0xff] }
 0x53a   :  { %964 = vmatmul.msk.f32.gmra.mxu0 %vm47_vm0, %v37_v19 }
 0x53b   :  { %v1042_v20 = vpop.eup %1041 }
 0x53c   :  { %337 = vrot.lane.b32.xlu0 %v1042_v20, %s1092_s19  ;;  %v333_v29 = vmul.f32 0.5, %v1042_v20  ;;  %v38_v20 = vld [vmem:[%s1411_s0 + $0x28] sm:$0xff] }
 0x53e   :  { %v334_v30 = vadd.f32 0.5, %v333_v29 }
 0x540   :  { %v335_v34 = vmul.f32 %v334_v30, %v250_v54 }
 0x542   :  { %965 = vmatmul.msk.f32.gmra.mxu0 %vm47_vm0, %v38_v20 }
 0x5a6   :  { %v372_v27 = vpop.permute.xlu1 %371 }
 0x5a7   :  { %v374_v28 = vmul.f32 %v372_v27, %v368_v26 }
 0x5a9   :  { %376 = vrot.lane.b32.xlu0 %v374_v28, %s1093_s20  ;;  %v39_v28 = vld [vmem:[%s1411_s0 + $0x30] sm:$0xff] }
 0x5aa   :  { %966 = vmatmul.msk.f32.gmra.mxu0 %vm47_vm0, %v39_v28 }
 0x5ae   :  { %v338_v31 = vpop.permute.xlu0 %337 }
 0x5af   :  { %v340_v32 = vmul.f32 %v338_v31, %v334_v30 }
 0x5b1   :  { %342 = vrot.lane.b32.xlu2 %v340_v32, %s1093_s20  ;;  %v40_v32 = vld [vmem:[%s1411_s0 + $0x38] sm:$0xff] }
 0x5b2   :  { %967 = vmatmul.msk.f32.gmra.mxu0 %vm47_vm0, %v40_v32 }
 0x60b   :  { %v343_v35 = vpop.permute.xlu2 %342 }
 0x60c   :  { %v1262_v36 = vadd.f32 %v343_v35, %v335_v34 }
 0x60e   :  { %1043 = vtanh.f32 %v1262_v36 }
 0x614   :  { %v1044_v37 = vpop.eup %1043 }
 0x615   :  { %348 = vrot.lane.b32.xlu1 %v1044_v37, %s1092_s19 }
 0x61b   :  { %v377_v39 = vpop.permute.xlu0 %376 }
 0x61c   :  { %v379_v40 = vadd.f32 %v377_v39, %v369_v38 }
 0x61e   :  { %1045 = vtanh.f32 %v379_v40 }
 0x624   :  { %v1046_v41 = vpop.eup %1045 }
 0x625   :  { %382 = vrot.lane.b32.xlu2 %v1046_v41, %s1092_s19 }
 0x67f   :  { %v383_v43 = vpop.permute.xlu2 %382 }
 0x680   :  { %v385_v44 = vmul.f32 %v383_v43, %v368_v26 }
 0x682   :  { %v386_v45 = vpack.c.bf16 %v385_v44, %v385_v44 }
 0x684   :  { %408 = vrot.lane.b32.xlu1 %v386_v45, %s1093_s20 }
 0x687   :  { %v349_v46 = vpop.permute.xlu1 %348 }
 0x688   :  { %v351_v47 = vmul.f32 %v349_v46, %v334_v30 }
 0x68a   :  { %v387_v48 = vpack.c.bf16 %v351_v47, %v351_v47 }
 0x68c   :  { %389 = vrot.lane.b32.xlu0 %v387_v48, %s1093_s20 }
 0x6f6   :  { %v409_v49 = vpop.permute.xlu1 %408 }
 0x6f7   :  { %998 = vmatmul.msk.bf16.vlgmr.msra.gmra.mxu3 %vm141_vm1, %v409_v49  ;;  %999 = vmatmul.msk.bf16.vlgmr.msrb.gmra.mxu1 %vm141_vm1, %v409_v49 }
 0x6f8   :  { %643 = vmatpush.bf16.msra.mxu3 %v1147_v0  ;;  %704 = vmatpush.bf16.msrb.mxu1 %v1192_v22 }
 0x6fc   :  { %644 = vmatpush.bf16.msra.mxu3 %v1162_v4  ;;  %705 = vmatpush.bf16.msrb.mxu1 %v1207_v25 }
 0x6fe   :  { %v390_v50 = vpop.permute.xlu0 %389 }
 0x6ff   :  { %997 = vmatmul.msk.bf16.vlgmr.msra.gmra.mxu2 %vm141_vm1, %v390_v50 }
 0x700   :  { %609 = vmatpush.bf16.msra.mxu2 %v1192_v22 }
 0x704   :  { %610 = vmatpush.bf16.msra.mxu2 %v1207_v25 }
 0x774   :  { %v456_v53 = vpop.f32.mrf.mxu1 }
 0x775   :  { %v460_v54 = vadd.f32 %v456_v53, %v99_v52 }
 0x777   :  { %1047 = vtanh.f32 %v460_v54 }
 0x77a   :  { %v422_v55 = vpop.f32.mrf.mxu3 }
 0x77c   :  { %v458_v56 = vpop.f32.mrf.mxu1 }
 0x77d   :  { %v1048_v57 = vpop.eup %1047 }
 0x77e   :  { %466 = vrot.lane.b32.xlu0 %v1048_v57, %s1092_s19  ;;  %v462_v7 = vmul.f32 0.5, %v1048_v57 }
 0x780   :  { %v463_v8 = vadd.f32 0.5, %v462_v7 }
 0x782   :  { %v403_v58 = vpop.f32.mrf.mxu2  ;;  %v424_v59 = vpop.f32.mrf.mxu3  ;;  %v464_v11 = vmul.f32 %v463_v8, %v379_v40 }
 0x783   :  { %v423_v60 = vadd.f32 %v422_v55, %v403_v58 }
 0x785   :  { %v426_v61 = vadd.f32 %v1230_v33, %v423_v60 }
 0x787   :  { %1049 = vtanh.f32 %v426_v61 }
 0x78a   :  { %v405_v62 = vpop.f32.mrf.mxu2 }
 0x78d   :  { %v1050_v63 = vpop.eup %1049 }
 0x78e   :  { %432 = vrot.lane.b32.xlu2 %v1050_v63, %s1092_s19  ;;  %v428_v1 = vmul.f32 0.5, %v1050_v63 }
 0x790   :  { %v429_v2 = vadd.f32 0.5, %v428_v1 }
 0x792   :  { %v430_v15 = vmul.f32 %v429_v2, %v1262_v36  ;;  %v101_v36 = vpop.f32.mrf.mxu0 }
 0x793   :  { %v102_v41 = vadd.f32 %v1175_v6, %v101_v36 }
 0x79a   :  { %v104_v37 = vpop.f32.mrf.mxu0 }
 0x7a2   :  { %v1321_v38 = vpop.f32.mrf.mxu0 }
 0x7aa   :  { %v1323_v39 = vpop.f32.mrf.mxu0 }
 0x7e8   :  { %v433_v3 = vpop.permute.xlu2 %432 }
 0x7e9   :  { %v435_v5 = vmul.f32 %v433_v3, %v429_v2 }
 0x7eb   :  { %437 = vrot.lane.b32.xlu1 %v435_v5, %s1093_s20 }
 0x7f0   :  { %v467_v9 = vpop.permute.xlu0 %466 }
 0x7f1   :  { %v469_v10 = vmul.f32 %v467_v9, %v463_v8 }
 0x7f3   :  { %471 = vrot.lane.b32.xlu2 %v469_v10, %s1093_s20 }
 0x84d   :  { %v472_v12 = vpop.permute.xlu2 %471 }
 0x84e   :  { %v1288_v13 = vadd.f32 %v472_v12, %v464_v11 }
 0x850   :  { %1051 = vtanh.f32 %v1288_v13 }
 0x856   :  { %v1052_v14 = vpop.eup %1051 }
 0x857   :  { %477 = vrot.lane.b32.xlu1 %v1052_v14, %s1092_s19 }
 0x85d   :  { %v438_v16 = vpop.permute.xlu1 %437 }
 0x85e   :  { %v440_v17 = vadd.f32 %v438_v16, %v430_v15 }
 0x860   :  { %1053 = vtanh.f32 %v440_v17 }
 0x866   :  { %v1054_v18 = vpop.eup %1053 }
 0x867   :  { %443 = vrot.lane.b32.xlu0 %v1054_v18, %s1092_s19 }
 0x8c9   :  { %v478_v23 = vpop.permute.xlu1 %477 }
 0x8ca   :  { %v480_v26 = vmul.f32 %v478_v23, %v463_v8 }
 0x8cc   :  { %v481_v27 = vpack.c.bf16 %v480_v26, %v480_v26 }
 0x8ce   :  { %503 = vrot.lane.b32.xlu0 %v481_v27, %s1093_s20 }
 0x8d9   :  { %v444_v29 = vpop.permute.xlu0 %443 }
 0x8da   :  { %v446_v30 = vmul.f32 %v444_v29, %v429_v2 }
 0x8dc   :  { %v482_v31 = vpack.c.bf16 %v446_v30, %v446_v30 }
 0x8de   :  { %484 = vrot.lane.b32.xlu2 %v482_v31, %s1093_s20 }
 0x938   :  { %v485_v34 = vpop.permute.xlu2 %484 }
 0x939   :  { %1000 = vmatmul.msk.bf16.vlgmr.msrb.gmra.mxu2 %vm141_vm1, %v485_v34 }
 0x93a   :  { %738 = vmatpush.bf16.msrb.mxu2 %v1147_v0 }
 0x93e   :  { %739 = vmatpush.bf16.msrb.mxu2 %v1162_v4 }
 0x940   :  { %v504_v35 = vpop.permute.xlu0 %503 }
 0x941   :  { %1001 = vmatmul.msk.bf16.vlgmr.msrb.gmra.mxu3 %vm141_vm1, %v504_v35  ;;  %1002 = vmatmul.msk.bf16.vlgmr.msrb.gmra.mxu0 %vm141_vm1, %v504_v35 }
 0x942   :  { %780 = vmatpush.bf16.msrb.mxu3 %v1187_v21  ;;  %799 = vmatpush.bf16.msrb.mxu0 %v1192_v22 }
 0x946   :  { %781 = vmatpush.bf16.msrb.mxu3 %v1201_v24  ;;  %800 = vmatpush.bf16.msrb.mxu0 %v1207_v25 }
 0x9bc   :  { %v498_v40 = vpop.f32.mrf.mxu2 }
 0x9be   :  { %v551_v42 = vpop.f32.mrf.mxu0 }
 0x9bf   :  { %v555_v43 = vadd.f32 %v551_v42, %v102_v41 }
 0x9c1   :  { %1055 = vtanh.f32 %v555_v43 }
 0x9c4   :  { %v500_v44 = vpop.f32.mrf.mxu2  ;;  %v517_v45 = vpop.f32.mrf.mxu3 }
 0x9c5   :  { %v518_v46 = vadd.f32 %v517_v45, %v498_v40 }
 0x9c6   :  { %v553_v47 = vpop.f32.mrf.mxu0 }
 0x9c7   :  { %v1056_v48 = vpop.eup %1055  ;;  %v521_v49 = vadd.f32 %v1230_v33, %v518_v46 }
 0x9c8   :  { %561 = vrot.lane.b32.xlu1 %v1056_v48, %s1092_s19  ;;  %v557_v56 = vmul.f32 0.5, %v1056_v48 }
 0x9c9   :  { %1057 = vtanh.f32 %v521_v49 }
 0x9ca   :  { %v558_v57 = vadd.f32 0.5, %v557_v56 }
 0x9cc   :  { %v519_v50 = vpop.f32.mrf.mxu3  ;;  %v559_v1 = vmul.f32 %v558_v57, %v1288_v13 }
 0x9cf   :  { %v1058_v51 = vpop.eup %1057 }
 0x9d0   :  { %527 = vrot.lane.b32.xlu2 %v1058_v51, %s1092_s19  ;;  %v523_v52 = vmul.f32 0.5, %v1058_v51 }
 0x9d2   :  { %v524_v53 = vadd.f32 0.5, %v523_v52 }
 0x9d4   :  { %v525_v60 = vmul.f32 %v524_v53, %v440_v17  ;;  %v105_v17 = vadd.f32 %v1175_v6, %v104_v37 }
 0xa2a   :  { %v528_v54 = vpop.permute.xlu2 %527 }
 0xa2b   :  { %v530_v55 = vmul.f32 %v528_v54, %v524_v53 }
 0xa2d   :  { %532 = vrot.lane.b32.xlu1 %v530_v55, %s1093_s20  ;;  %v108_v55 = vadd.f32 %v1175_v6, %v1321_v38 }
 0xa3a   :  { %v562_v58 = vpop.permute.xlu1 %561 }
 0xa3b   :  { %v564_v59 = vmul.f32 %v562_v58, %v558_v57 }
 0xa3d   :  { %566 = vrot.lane.b32.xlu0 %v564_v59, %s1093_s20 }
 0xa9f   :  { %v533_v61 = vpop.permute.xlu1 %532 }
 0xaa0   :  { %v535_v62 = vadd.f32 %v533_v61, %v525_v60 }
 0xaa2   :  { %1059 = vtanh.f32 %v535_v62 }
 0xaa8   :  { %v1060_v63 = vpop.eup %1059 }
 0xaa9   :  { %538 = vrot.lane.b32.xlu0 %v1060_v63, %s1092_s19 }
 0xaaf   :  { %v567_v2 = vpop.permute.xlu0 %566 }
 0xab0   :  { %v569_v3 = vadd.f32 %v567_v2, %v559_v1 }
 0xab2   :  { %1061 = vtanh.f32 %v569_v3 }
 0xab8   :  { %v1062_v5 = vpop.eup %1061 }
 0xab9   :  { %572 = vrot.lane.b32.xlu2 %v1062_v5, %s1092_s19 }
 0xb13   :  { %v573_v7 = vpop.permute.xlu2 %572 }
 0xb14   :  { %v575_v8 = vmul.f32 %v573_v7, %v558_v57 }
 0xb16   :  { %v576_v9 = vpack.c.bf16 %v575_v8, %v575_v8 }
 0xb18   :  { %598 = vrot.lane.b32.xlu1 %v576_v9, %s1093_s20 }
 0xb1b   :  { %v539_v10 = vpop.permute.xlu0 %538 }
 0xb1c   :  { %v541_v11 = vmul.f32 %v539_v10, %v524_v53 }
 0xb1e   :  { %v577_v12 = vpack.c.bf16 %v541_v11, %v541_v11 }
 0xb20   :  { %579 = vrot.lane.b32.xlu2 %v577_v12, %s1093_s20 }
 0xb7a   :  { %v580_v14 = vpop.permute.xlu2 %579 }
 0xb7b   :  { %1003 = vmatmul.msk.bf16.vlgmr.msra.gmra.mxu1 %vm141_vm1, %v580_v14 }
 0xb7c   :  { %833 = vmatpush.bf16.msra.mxu1 %v1147_v0 }
 0xb80   :  { %834 = vmatpush.bf16.msra.mxu1 %v1162_v4 }
 0xb8a   :  { %v599_v13 = vpop.permute.xlu1 %598 }
 0xb8b   :  { %1004 = vmatmul.msk.bf16.vlgmr.msra.gmra.mxu2 %vm141_vm1, %v599_v13  ;;  %1005 = vmatmul.msk.bf16.vlgmr.msra.gmra.mxu3 %vm141_vm1, %v599_v13 }
 0xb8c   :  { %894 = vmatpush.bf16.msra.mxu3 %v1192_v22  ;;  %875 = vmatpush.bf16.msra.mxu2 %v1187_v21 }
 0xb90   :  { %895 = vmatpush.bf16.msra.mxu3 %v1207_v25  ;;  %876 = vmatpush.bf16.msra.mxu2 %v1201_v24 }
 0xbf8   :  { %v593_v15 = vpop.f32.mrf.mxu1 }
 0xc00   :  { %v595_v16 = vpop.f32.mrf.mxu1 }
 0xc0e   :  { %v612_v0 = vpop.f32.mrf.mxu2  ;;  %v646_v18 = vpop.f32.mrf.mxu3 }
 0xc0f   :  { %v613_v4 = vadd.f32 %v612_v0, %v593_v15  ;;  %v650_v19 = vadd.f32 %v646_v18, %v105_v17 }
 0xc11   :  { %v616_v20 = vadd.f32 %v1230_v33, %v613_v4  ;;  %1063 = vtanh.f32 %v650_v19 }
 0xc13   :  { %1065 = vtanh.f32 %v616_v20 }
 0xc16   :  { %v614_v23 = vpop.f32.mrf.mxu2  ;;  %v648_v22 = vpop.f32.mrf.mxu3 }
 0xc17   :  { %v1064_v26 = vpop.eup %1063 }
 0xc18   :  { %656 = vrot.lane.b32.xlu1 %v1064_v26, %s1092_s19  ;;  %v652_v24 = vmul.f32 0.5, %v1064_v26 }
 0xc19   :  { %v1066_v21 = vpop.eup %1065 }
 0xc1a   :  { %622 = vrot.lane.b32.xlu0 %v1066_v21, %s1092_s19  ;;  %v618_v25 = vmul.f32 0.5, %v1066_v21  ;;  %v653_v27 = vadd.f32 0.5, %v652_v24 }
 0xc1c   :  { %v619_v30 = vadd.f32 0.5, %v618_v25  ;;  %v654_v40 = vmul.f32 %v653_v27, %v569_v3  ;;  %v111_v25 = vadd.f32 %v1175_v6, %v1323_v39 }
 0xc1e   :  { %v620_v34 = vmul.f32 %v619_v30, %v535_v62 }
 0xc8a   :  { %v657_v28 = vpop.permute.xlu1 %656 }
 0xc8b   :  { %v659_v29 = vmul.f32 %v657_v28, %v653_v27 }
 0xc8c   :  { %v623_v31 = vpop.permute.xlu0 %622 }
 0xc8d   :  { %v625_v32 = vmul.f32 %v623_v31, %v619_v30  ;;  %661 = vrot.lane.b32.xlu0 %v659_v29, %s1093_s20 }
 0xc8f   :  { %627 = vrot.lane.b32.xlu2 %v625_v32, %s1093_s20 }
 0xce9   :  { %v628_v35 = vpop.permute.xlu2 %627 }
 0xcea   :  { %v630_v36 = vadd.f32 %v628_v35, %v620_v34 }
 0xcec   :  { %1067 = vtanh.f32 %v630_v36 }
 0xcf2   :  { %v1068_v37 = vpop.eup %1067 }
 0xcf3   :  { %633 = vrot.lane.b32.xlu1 %v1068_v37, %s1092_s19 }
 0xcff   :  { %v662_v41 = vpop.permute.xlu0 %661 }
 0xd00   :  { %v664_v42 = vadd.f32 %v662_v41, %v654_v40 }
 0xd02   :  { %1069 = vtanh.f32 %v664_v42 }
 0xd08   :  { %v1070_v43 = vpop.eup %1069 }
 0xd09   :  { %667 = vrot.lane.b32.xlu2 %v1070_v43, %s1092_s19 }
 0xd63   :  { %v668_v44 = vpop.permute.xlu2 %667 }
 0xd64   :  { %v670_v45 = vmul.f32 %v668_v44, %v653_v27 }
 0xd65   :  { %v634_v46 = vpop.permute.xlu1 %633 }
 0xd66   :  { %v671_v47 = vpack.c.bf16 %v670_v45, %v670_v45  ;;  %v636_v48 = vmul.f32 %v634_v46, %v619_v30 }
 0xd68   :  { %v672_v49 = vpack.c.bf16 %v636_v48, %v636_v48  ;;  %693 = vrot.lane.b32.xlu1 %v671_v47, %s1093_s20 }
 0xd6a   :  { %674 = vrot.lane.b32.xlu0 %v672_v49, %s1093_s20 }
 0xdda   :  { %v694_v50 = vpop.permute.xlu1 %693 }
 0xddb   :  { %1007 = vmatmul.msk.bf16.vlgmr.msrb.gmra.mxu1 %vm141_vm1, %v694_v50  ;;  %1008 = vmatmul.msk.bf16.vlgmr.msrb.gmra.mxu2 %vm141_vm1, %v694_v50 }
 0xddc   :  { %v675_v51 = vpop.permute.xlu0 %674 }
 0xddd   :  { %1006 = vmatmul.msk.bf16.vlgmr.msra.gmra.mxu0 %vm141_vm1, %v675_v51 }
 0xe58   :  { %v707_v52 = vpop.f32.mrf.mxu1 }
 0xe5a   :  { %v688_v53 = vpop.f32.mrf.mxu0 }
 0xe5b   :  { %v708_v54 = vadd.f32 %v707_v52, %v688_v53 }
 0xe5d   :  { %v711_v56 = vadd.f32 %v1230_v33, %v708_v54 }
 0xe5e   :  { %v741_v57 = vpop.f32.mrf.mxu2 }
 0xe5f   :  { %1071 = vtanh.f32 %v711_v56  ;;  %v745_v58 = vadd.f32 %v741_v57, %v108_v55 }
 0xe60   :  { %v709_v59 = vpop.f32.mrf.mxu1 }
 0xe61   :  { %1073 = vtanh.f32 %v745_v58 }
 0xe62   :  { %v690_v60 = vpop.f32.mrf.mxu0 }
 0xe65   :  { %v1072_v61 = vpop.eup %1071 }
 0xe66   :  { %v743_v62 = vpop.f32.mrf.mxu2  ;;  %717 = vrot.lane.b32.xlu2 %v1072_v61, %s1092_s19  ;;  %v713_v1 = vmul.f32 0.5, %v1072_v61 }
 0xe67   :  { %v1074_v63 = vpop.eup %1073 }
 0xe68   :  { %751 = vrot.lane.b32.xlu0 %v1074_v63, %s1092_s19  ;;  %v714_v2 = vadd.f32 0.5, %v713_v1  ;;  %v747_v38 = vmul.f32 0.5, %v1074_v63 }
 0xe6a   :  { %v748_v7 = vadd.f32 0.5, %v747_v38  ;;  %v715_v10 = vmul.f32 %v714_v2, %v630_v36 }
 0xe6c   :  { %v749_v14 = vmul.f32 %v748_v7, %v664_v42 }
 0xec0   :  { %v718_v3 = vpop.permute.xlu2 %717 }
 0xec1   :  { %v720_v5 = vmul.f32 %v718_v3, %v714_v2 }
 0xec3   :  { %722 = vrot.lane.b32.xlu1 %v720_v5, %s1093_s20 }
 0xeda   :  { %v752_v8 = vpop.permute.xlu0 %751 }
 0xedb   :  { %v754_v9 = vmul.f32 %v752_v8, %v748_v7 }
 0xedd   :  { %756 = vrot.lane.b32.xlu2 %v754_v9, %s1093_s20 }
 0xf35   :  { %v723_v11 = vpop.permute.xlu1 %722 }
 0xf36   :  { %v725_v12 = vadd.f32 %v723_v11, %v715_v10 }
 0xf37   :  { %v757_v13 = vpop.permute.xlu2 %756 }
 0xf38   :  { %1075 = vtanh.f32 %v725_v12  ;;  %v759_v15 = vadd.f32 %v757_v13, %v749_v14  ;;  %v924_v13 = vld [vmem:[%s1416_s7 + $0x10] sm:$0xff] }
 0xf3a   :  { %1077 = vtanh.f32 %v759_v15 }
 0xf3e   :  { %v1076_v16 = vpop.eup %1075 }
 0xf3f   :  { %728 = vrot.lane.b32.xlu0 %v1076_v16, %s1092_s19  ;;  %v922_v16 = vld [vmem:[%s1416_s7] sm:$0xff] }
 0xf40   :  { %v1078_v17 = vpop.eup %1077 }
 0xf41   :  { %762 = vrot.lane.b32.xlu1 %v1078_v17, %s1092_s19 }
 0xfb1   :  { %v729_v0 = vpop.permute.xlu0 %728 }
 0xfb2   :  { %v731_v18 = vmul.f32 %v729_v0, %v714_v2 }
 0xfb3   :  { %v763_v4 = vpop.permute.xlu1 %762 }
 0xfb4   :  { %v767_v19 = vpack.c.bf16 %v731_v18, %v731_v18  ;;  %v765_v20 = vmul.f32 %v763_v4, %v748_v7  ;;  %v1026_v4 = vld [vmem:[%s1417_s8] ss:$0 sm:$0xff] }
 0xfb6   :  { %v766_v23 = vpack.c.bf16 %v765_v20, %v765_v20  ;;  %769 = vrot.lane.b32.xlu2 %v767_v19, %s1093_s20 }
 0xfb8   :  { %788 = vrot.lane.b32.xlu0 %v766_v23, %s1093_s20 }
0x1010   :  { %v770_v22 = vpop.permute.xlu2 %769 }
0x1011   :  { %1009 = vmatmul.msk.bf16.vlgmr.msrb.gmra.mxu3 %vm141_vm1, %v770_v22 }
0x102a   :  { %v789_v26 = vpop.permute.xlu0 %788 }
0x102b   :  { %1010 = vmatmul.msk.bf16.vlgmr.msrb.gmra.mxu0 %vm141_vm1, %v789_v26  ;;  %1011 = vmatmul.msk.bf16.vlgmr.msra.gmra.mxu1 %vm141_vm1, %v789_v26 }
0x1094   :  { %v783_v21 = vpop.f32.mrf.mxu3 }
0x109c   :  { %v785_v24 = vpop.f32.mrf.mxu3 }
0x10a8   :  { %v802_v27 = vpop.f32.mrf.mxu0  ;;  %v836_v28 = vpop.f32.mrf.mxu1 }
0x10a9   :  { %v803_v29 = vadd.f32 %v802_v27, %v783_v21  ;;  %v840_v30 = vadd.f32 %v836_v28, %v111_v25 }
0x10ab   :  { %v806_v31 = vadd.f32 %v1230_v33, %v803_v29  ;;  %1079 = vtanh.f32 %v840_v30 }
0x10ad   :  { %1081 = vtanh.f32 %v806_v31 }
0x10b0   :  { %v804_v32 = vpop.f32.mrf.mxu0  ;;  %v838_v34 = vpop.f32.mrf.mxu1 }
0x10b1   :  { %v1080_v35 = vpop.eup %1079 }
0x10b2   :  { %846 = vrot.lane.b32.xlu2 %v1080_v35, %s1092_s19  ;;  %v842_v37 = vmul.f32 0.5, %v1080_v35 }
0x10b3   :  { %v1082_v36 = vpop.eup %1081 }
0x10b4   :  { %812 = vrot.lane.b32.xlu1 %v1082_v36, %s1092_s19  ;;  %v843_v40 = vadd.f32 0.5, %v842_v37  ;;  %v808_v39 = vmul.f32 0.5, %v1082_v36 }
0x10b6   :  { %v809_v42 = vadd.f32 0.5, %v808_v39  ;;  %v844_v45 = vmul.f32 %v843_v40, %v759_v15  ;;  %v923_v15 = vld [vmem:[%s1416_s7 + $0x8] sm:$0xff] }
0x10b8   :  { %v810_v49 = vmul.f32 %v809_v42, %v725_v12 }
0x110c   :  { %v847_v41 = vpop.permute.xlu2 %846 }
0x110d   :  { %v849_v6 = vmul.f32 %v847_v41, %v843_v40 }
0x110f   :  { %851 = vrot.lane.b32.xlu1 %v849_v6, %s1093_s20 }
0x1126   :  { %v813_v43 = vpop.permute.xlu1 %812 }
0x1127   :  { %v815_v44 = vmul.f32 %v813_v43, %v809_v42 }
0x1129   :  { %817 = vrot.lane.b32.xlu0 %v815_v44, %s1093_s20 }
0x1181   :  { %v852_v46 = vpop.permute.xlu1 %851 }
0x1182   :  { %v854_v47 = vadd.f32 %v852_v46, %v844_v45 }
0x1184   :  { %1083 = vtanh.f32 %v854_v47 }
0x118a   :  { %v1084_v48 = vpop.eup %1083 }
0x118b   :  { %857 = vrot.lane.b32.xlu0 %v1084_v48, %s1092_s19 }
0x119b   :  { %v818_v50 = vpop.permute.xlu0 %817 }
0x119c   :  { %v820_v51 = vadd.f32 %v818_v50, %v810_v49 }
0x119e   :  { %1085 = vtanh.f32 %v820_v51 }
0x11a4   :  { %v1086_v52 = vpop.eup %1085 }
0x11a5   :  { %823 = vrot.lane.b32.xlu2 %v1086_v52, %s1092_s19 }
0x11fd   :  { %v858_v53 = vpop.permute.xlu0 %857 }
0x11fe   :  { %v860_v54 = vmul.f32 %v858_v53, %v843_v40 }
0x11ff   :  { %v824_v55 = vpop.permute.xlu2 %823 }
0x1200   :  { %v861_v56 = vpack.c.bf16 %v860_v54, %v860_v54  ;;  %v826_v57 = vmul.f32 %v824_v55, %v809_v42 }
0x1202   :  { %v862_v58 = vpack.c.bf16 %v826_v57, %v826_v57  ;;  %883 = vrot.lane.b32.xlu2 %v861_v56, %s1093_s20 }
0x1204   :  { %864 = vrot.lane.b32.xlu1 %v862_v58, %s1093_s20 }
0x125c   :  { %v884_v59 = vpop.permute.xlu2 %883 }
0x125d   :  { %1013 = vmatmul.msk.bf16.vlgmr.msra.gmra.mxu3 %vm141_vm1, %v884_v59 }
0x1276   :  { %v865_v60 = vpop.permute.xlu1 %864 }
0x1277   :  { %1012 = vmatmul.msk.bf16.vlgmr.msra.gmra.mxu2 %vm141_vm1, %v865_v60 }
0x12e0   :  { %v897_v61 = vpop.f32.mrf.mxu3 }
0x12e8   :  { %v899_v62 = vpop.f32.mrf.mxu3 }
0x12fa   :  { %v878_v63 = vpop.f32.mrf.mxu2 }
0x12fb   :  { %v898_v1 = vadd.f32 %v897_v61, %v878_v63 }
0x12fd   :  { %v901_v2 = vadd.f32 %v1230_v33, %v898_v1  ;;  %v925_v33 = vld [vmem:[%s1416_s7 + $0x18] sm:$0xff] }
0x12fe   :  { %947 = vmatpush.msra.mxu0 %v925_v33 }
0x12ff   :  { %1087 = vtanh.f32 %v901_v2 }
0x1300   :  { %948 = vmatpush.msra.mxu0 %v924_v13 }
0x1302   :  { %v880_v3 = vpop.f32.mrf.mxu2  ;;  %949 = vmatpush.msra.mxu0 %v923_v15 }
0x1304   :  { %950 = vmatpush.msra.mxu0 %v922_v16 }
0x1305   :  { %v1088_v5 = vpop.eup %1087 }
0x1306   :  { %907 = vrot.lane.b32.xlu0 %v1088_v5, %s1092_s19  ;;  %v903_v38 = vmul.f32 0.5, %v1088_v5 }
0x1308   :  { %v904_v7 = vadd.f32 0.5, %v903_v38 }
0x130a   :  { %v905_v10 = vmul.f32 %v904_v7, %v820_v51 }
0x1378   :  { %v908_v8 = vpop.permute.xlu0 %907 }
0x1379   :  { %v910_v9 = vmul.f32 %v908_v8, %v904_v7 }
0x137b   :  { %912 = vrot.lane.b32.xlu1 %v910_v9, %s1093_s20 }
0x13ed   :  { %v913_v11 = vpop.permute.xlu1 %912 }
0x13ee   :  { %v915_v12 = vadd.f32 %v913_v11, %v905_v10 }
0x13f0   :  { %1089 = vtanh.f32 %v915_v12 }
0x13f6   :  { %v1090_v14 = vpop.eup %1089 }
0x13f7   :  { %918 = vrot.lane.b32.xlu2 %v1090_v14, %s1092_s19 }
0x1451   :  { %v919_v17 = vpop.permute.xlu2 %918 }
0x1452   :  { %v921_v0 = vmul.f32 %v919_v17, %v904_v7 }
0x1454   :  { %931 = vrot.lane.b32.xlu0 %v921_v0, %s1093_s20 }
0x14c6   :  { %v932_v18 = vpop.permute.xlu0 %931 }
0x14c7   :  { %1014 = vmatmul.msk.f32.vlgmr.msra.gmra.mxu0 %vm141_vm1, %v932_v18 }
0x1544   :  { %v952_v19 = vpop.f32.mrf.mxu0 }
0x1545   :  { %v953_v20 = vadd.f32 %v1026_v4, %v952_v19 }
0x1547   :  { %955 = vst [vmem:[%s1418_s9] sm:$0xff] %v953_v20 }

</bundles_post_ra>
